<compile_context>
chip_gen: v7x
topology: tpu7x:2x2x1
jax: 0.10.0
libtpu: 0.0.40
codegen_flags: <defaults>
</compile_context>

<pallas_src>
import jax
import jax.numpy as jnp
from jax.experimental import pallas as pl
from jax.experimental.pallas import tpu as pltpu


def _round_up(x: int, m: int) -> int:
    return ((x + m - 1) // m) * m


# --------------------------------------------------------------------------- #
# Kernel: one (batch, L-tile) block -> full 3-layer MLP in one pass.
# Layout is feature-major (C on sublanes, L on lanes) so every load / VPU op /
# MXU operand / store is lane-dense and no transposes are needed anywhere.
# --------------------------------------------------------------------------- #
def _mlp_kernel(x_ref, t_ref, w1_ref, b1_ref, w2_ref, b2_ref, w3_ref, b3_ref,
                y_ref):
    f32 = jnp.float32
    x = x_ref[0].astype(f32)        # (d_in, TL)
    tt = t_ref[0].astype(f32)       # (1, TL)
    w1 = w1_ref[...]                # (H_pad, C) f32
    d_in = x.shape[0]

    # fc1 + tanh: tiny contraction (C = d_in + 1 = 3) -> cheap VPU broadcast
    # MACs in f32; avoids a degenerate K=2 MXU matmul entirely.
    z1 = b1_ref[...] + w1[:, d_in:d_in + 1] * tt
    for j in range(d_in):           # d_in is static -> unrolled at trace time
        z1 = z1 + w1[:, j:j + 1] * x[j:j + 1, :]
    h1 = jnp.tanh(z1)               # (H_pad, TL) f32

    # fc2 + tanh: dominant matmul. Operands in w2's dtype (bf16 by default),
    # f32 accumulation on the MXU.
    z2 = jnp.dot(w2_ref[...], h1.astype(w2_ref.dtype),
                 preferred_element_type=f32) + b2_ref[...]
    h2 = jnp.tanh(z2)               # (H_pad, TL) f32

    # fc3
    y = jnp.dot(w3_ref[...], h2.astype(w3_ref.dtype),
                preferred_element_type=f32) + b3_ref[...]
    y_ref[0] = y.astype(y_ref.dtype)


# --------------------------------------------------------------------------- #
# Wrapper
# --------------------------------------------------------------------------- #
def mlp_forward(x_input, t, w1, b1, w2, b2, w3, b3, *,
                tl_target=2048, use_bf16=True):
    """x_input: (B, input_dim, L); t: (B, 1, L).
    w1: (H, input_dim+1), w2: (H, H), w3: (input_dim, H); b*: (out,).
    Returns (B, input_dim, L), matching the PyTorch module."""
    B, d_in, L = x_input.shape
    assert t.shape == (B, 1, L)
    H, C = w1.shape
    d_out = w3.shape[0]
    assert C == d_in + 1 and w2.shape == (H, H) and w3.shape == (d_out, H)

    f32 = jnp.float32
    mm_dtype = jnp.bfloat16 if use_bf16 else f32
    H_pad = _round_up(H, 128)       # hidden dim -> MXU friendly

    # ---- L tiling: always lane-dense (multiple of 128). When L is already a
    # multiple of 128 there is NO wrapper copy of the big input and NO output
    # slice; partial last tiles (L % TL != 0) are handled by Pallas masking.
    L_arr = _round_up(L, 128)
    if L_arr != L:                  # only for ragged / short L (small arrays)
        x_k = jnp.pad(x_input, ((0, 0), (0, 0), (0, L_arr - L)))
        t_k = jnp.pad(t, ((0, 0), (0, 0), (0, L_arr - L)))
    else:
        x_k, t_k = x_input, t
    TL = min(max(128, _round_up(tl_target, 128)), L_arr)
    nL = pl.cdiv(L_arr, TL)

    # ---- parameters: zero-pad hidden dim (exact: tanh(0)=0 into zero columns),
    # pre-cast the two big matmul weights to bf16 once.
    w1p = jnp.pad(w1.astype(f32), ((0, H_pad - H), (0, 0)))                # (H_pad, C)
    b1p = jnp.pad(b1.astype(f32).reshape(H, 1), ((0, H_pad - H), (0, 0)))
    w2p = jnp.pad(w2.astype(f32), ((0, H_pad - H), (0, H_pad - H))).astype(mm_dtype)
    b2p = jnp.pad(b2.astype(f32).reshape(H, 1), ((0, H_pad - H), (0, 0)))
    w3p = jnp.pad(w3.astype(f32), ((0, 0), (0, H_pad - H))).astype(mm_dtype)
    b3p = b3.astype(f32).reshape(d_out, 1)

    # ---- rough per-step VMEM footprint; only raise the scoped limit when a
    # very large TL would exceed the 16 MiB default (v5e).
    wbytes = 2 if use_bf16 else 4
    vmem_est = (3 * H_pad * TL * 4                       # live f32 intermediates
                + 4 * (d_in + 1 + d_out) * TL * 4        # double-buffered in/out blocks
                + 2 * (H_pad * H_pad + d_out * H_pad) * wbytes
                + 2 * H_pad * (C + 2) * 4)               # fc1 weights + biases
    cp = dict(dimension_semantics=("parallel", "parallel"))
    if vmem_est > 12 * 1024 * 1024:
        cp["vmem_limit_bytes"] = int(min(vmem_est * 2, 100 * 1024 * 1024))

    y = pl.pallas_call(
        _mlp_kernel,
        out_shape=jax.ShapeDtypeStruct((B, d_out, L_arr), x_input.dtype),
        grid=(B, nL),
        in_specs=[
            pl.BlockSpec((1, d_in, TL),   lambda b, l: (b, 0, l)),   # x_input block
            pl.BlockSpec((1, 1, TL),      lambda b, l: (b, 0, l)),   # t block
            pl.BlockSpec((H_pad, C),      lambda b, l: (0, 0)),      # w1 (resident)
            pl.BlockSpec((H_pad, 1),      lambda b, l: (0, 0)),      # b1
            pl.BlockSpec((H_pad, H_pad),  lambda b, l: (0, 0)),      # w2
            pl.BlockSpec((H_pad, 1),      lambda b, l: (0, 0)),      # b2
            pl.BlockSpec((d_out, H_pad),  lambda b, l: (0, 0)),      # w3
            pl.BlockSpec((d_out, 1),      lambda b, l: (0, 0)),      # b3
        ],
        out_specs=pl.BlockSpec((1, d_out, TL), lambda b, l: (b, 0, l)),
        compiler_params=pltpu.CompilerParams(**cp),
    )(x_k, t_k, w1p, b1p, w2p, b2p, w3p, b3p)

    return y if L_arr == L else y[:, :, :L]


# --------------------------------------------------------------------------- #
# Parameter init (mimics nn.Linear default: U(-1/sqrt(fan_in), 1/sqrt(fan_in)))
# --------------------------------------------------------------------------- #
def init_mlp_params(key, input_dim=2, hidden_num=100):
    ks = jax.random.split(key, 6)

    def lin(kw, kb, fan_in, fan_out):
        bound = fan_in ** -0.5
        w = jax.random.uniform(kw, (fan_out, fan_in), jnp.float32, -bound, bound)
        b = jax.random.uniform(kb, (fan_out,), jnp.float32, -bound, bound)
        return w, b

    w1, b1 = lin(ks[0], ks[1], input_dim + 1, hidden_num)
    w2, b2 = lin(ks[2], ks[3], hidden_num, hidden_num)
    w3, b3 = lin(ks[4], ks[5], hidden_num, input_dim)
    return dict(w1=w1, b1=b1, w2=w2, b2=b2, w3=w3, b3=b3)


# --------------------------------------------------------------------------- #
# Pure-jnp reference (mirrors the PyTorch forward exactly, f32)
# --------------------------------------------------------------------------- #
def _ref_mlp(x_input, t, w1, b1, w2, b2, w3, b3):
    hi = jax.lax.Precision.HIGHEST
    inputs = jnp.concatenate([x_input, t], axis=1)        # (B, C, L)
    inputs = jnp.transpose(inputs, (0, 2, 1))             # (B, L, C)
    h = jnp.tanh(jnp.matmul(inputs, w1.T, precision=hi) + b1)
    h = jnp.tanh(jnp.matmul(h, w2.T, precision=hi) + b2)
    y = jnp.matmul(h, w3.T, precision=hi) + b3            # (B, L, d_out)
    return jnp.transpose(y, (0, 2, 1))                    # (B, d_out, L)


if __name__ == "__main__":
    key = jax.random.PRNGKey(0)
    input_dim, hidden = 2, 100
    params = init_mlp_params(key, input_dim, hidden)

    # Cases: single lane-dense tile (L%128==0, TL=L); multi-tile with a partial
    # last tile (no wrapper copies at all); short ragged L (padded to 128).
    cases = [
        (2, 512, 2048),
        (2, 640, 256),
        (2, 100, 2048),
    ]

    for idx, (B, L, tlt) in enumerate(cases):
        kx, kt = jax.random.split(jax.random.fold_in(key, idx), 2)
        x = jax.random.normal(kx, (B, input_dim, L), dtype=jnp.float32)
        t = jax.random.normal(kt, (B, 1, L), dtype=jnp.float32)
        y_ref = _ref_mlp(x, t, **params)

        # default path: bf16 matmul operands, f32 accumulation
        y = jax.block_until_ready(mlp_forward(x, t, **params, tl_target=tlt))
        assert y.shape == (B, input_dim, L), y.shape
        assert jnp.allclose(y, y_ref, atol=5e-3, rtol=5e-3), (
            float(jnp.max(jnp.abs(y - y_ref))))

        # full-f32 path: tight tolerance validates tiling / padding structure
        y32 = jax.block_until_ready(
            mlp_forward(x, t, **params, tl_target=tlt, use_bf16=False))
        assert jnp.allclose(y32, y_ref, atol=1e-4, rtol=1e-4), (
            float(jnp.max(jnp.abs(y32 - y_ref))))

    print("KERNEL_OK")
</pallas_src>

<mosaic_0001>
module attributes {stable_mosaic.version = 11 : i64} {
  func.func @_mlp_kernel(%arg0: i32, %arg1: i32, %arg2: memref<1x2x512xf32, #tpu.memory_space<vmem>>, %arg3: memref<1x1x512xf32, #tpu.memory_space<vmem>>, %arg4: memref<128x3xf32, #tpu.memory_space<vmem>>, %arg5: memref<128x1xf32, #tpu.memory_space<vmem>>, %arg6: memref<128x128xbf16, #tpu.memory_space<vmem>>, %arg7: memref<128x1xf32, #tpu.memory_space<vmem>>, %arg8: memref<2x128xbf16, #tpu.memory_space<vmem>>, %arg9: memref<2x1xf32, #tpu.memory_space<vmem>>, %arg10: memref<1x2x512xf32, #tpu.memory_space<vmem>>) attributes {dimension_semantics = [#tpu.dimension_semantics<parallel>, #tpu.dimension_semantics<parallel>], iteration_bounds = array<i64: 2, 1>, scalar_prefetch = 0 : i64, scratch_operands = 0 : i64, tpu.core_type = #tpu.core_type<tc>, window_params = [{transform_indices = @transform_0, window_bounds = array<i64: 1, 2, 512>}, {transform_indices = @transform_1, window_bounds = array<i64: 1, 1, 512>}, {pipeline_mode = #tpu.pipeline_mode<synchronous>, transform_indices = @transform_2, window_bounds = array<i64: 128, 3>}, {pipeline_mode = #tpu.pipeline_mode<synchronous>, transform_indices = @transform_3, window_bounds = array<i64: 128, 1>}, {pipeline_mode = #tpu.pipeline_mode<synchronous>, transform_indices = @transform_4, window_bounds = array<i64: 128, 128>}, {pipeline_mode = #tpu.pipeline_mode<synchronous>, transform_indices = @transform_5, window_bounds = array<i64: 128, 1>}, {pipeline_mode = #tpu.pipeline_mode<synchronous>, transform_indices = @transform_6, window_bounds = array<i64: 2, 128>}, {pipeline_mode = #tpu.pipeline_mode<synchronous>, transform_indices = @transform_7, window_bounds = array<i64: 2, 1>}, {transform_indices = @transform_8, window_bounds = array<i64: 1, 2, 512>}]} {
    %c0 = arith.constant 0 : index
    %c0_0 = arith.constant 0 : index
    %c0_1 = arith.constant 0 : index
    %0 = vector.load %arg2[%c0, %c0_0, %c0_1] : memref<1x2x512xf32, #tpu.memory_space<vmem>>, vector<1x2x512xf32>
    %1 = vector.shape_cast %0 : vector<1x2x512xf32> to vector<2x512xf32>
    %c0_2 = arith.constant 0 : index
    %c0_3 = arith.constant 0 : index
    %c0_4 = arith.constant 0 : index
    %2 = vector.load %arg3[%c0_2, %c0_3, %c0_4] : memref<1x1x512xf32, #tpu.memory_space<vmem>>, vector<1x1x512xf32>
    %3 = vector.shape_cast %2 : vector<1x1x512xf32> to vector<1x512xf32>
    %c0_5 = arith.constant 0 : index
    %c0_6 = arith.constant 0 : index
    %4 = vector.load %arg4[%c0_5, %c0_6] : memref<128x3xf32, #tpu.memory_space<vmem>>, vector<128x3xf32>
    %c0_7 = arith.constant 0 : index
    %c0_8 = arith.constant 0 : index
    %5 = vector.load %arg5[%c0_7, %c0_8] : memref<128x1xf32, #tpu.memory_space<vmem>>, vector<128x1xf32>
    %6 = vector.extract_strided_slice %4 {offsets = [0, 2], sizes = [128, 1], strides = [1, 1]} : vector<128x3xf32> to vector<128x1xf32>
    %7 = vector.broadcast %6 : vector<128x1xf32> to vector<128x512xf32>
    %8 = vector.broadcast %3 : vector<1x512xf32> to vector<128x512xf32>
    %9 = arith.mulf %7, %8 : vector<128x512xf32>
    %10 = vector.broadcast %5 : vector<128x1xf32> to vector<128x512xf32>
    %11 = arith.addf %10, %9 : vector<128x512xf32>
    %12 = vector.extract_strided_slice %4 {offsets = [0, 0], sizes = [128, 1], strides = [1, 1]} : vector<128x3xf32> to vector<128x1xf32>
    %13 = vector.extract_strided_slice %1 {offsets = [0, 0], sizes = [1, 512], strides = [1, 1]} : vector<2x512xf32> to vector<1x512xf32>
    %14 = vector.broadcast %12 : vector<128x1xf32> to vector<128x512xf32>
    %15 = vector.broadcast %13 : vector<1x512xf32> to vector<128x512xf32>
    %16 = arith.mulf %14, %15 : vector<128x512xf32>
    %17 = arith.addf %11, %16 : vector<128x512xf32>
    %18 = vector.extract_strided_slice %4 {offsets = [0, 1], sizes = [128, 1], strides = [1, 1]} : vector<128x3xf32> to vector<128x1xf32>
    %19 = vector.extract_strided_slice %1 {offsets = [1, 0], sizes = [1, 512], strides = [1, 1]} : vector<2x512xf32> to vector<1x512xf32>
    %20 = vector.broadcast %18 : vector<128x1xf32> to vector<128x512xf32>
    %21 = vector.broadcast %19 : vector<1x512xf32> to vector<128x512xf32>
    %22 = arith.mulf %20, %21 : vector<128x512xf32>
    %23 = arith.addf %17, %22 : vector<128x512xf32>
    %24 = math.tanh %23 : vector<128x512xf32>
    %c0_9 = arith.constant 0 : index
    %c0_10 = arith.constant 0 : index
    %25 = vector.load %arg6[%c0_9, %c0_10] : memref<128x128xbf16, #tpu.memory_space<vmem>>, vector<128x128xbf16>
    %26 = arith.truncf %24 : vector<128x512xf32> to vector<128x512xbf16>
    %cst = arith.constant dense<0.000000e+00> : vector<128x512xf32>
    %27 = tpu.matmul %25, %26, %cst {dimension_numbers = #tpu.dot_dimension_numbers<[1], [0], [0], [1], [0, 0, 1, 1], [], []>} : vector<128x128xbf16>, vector<128x512xbf16>, vector<128x512xf32> -> vector<128x512xf32>
    %c0_11 = arith.constant 0 : index
    %c0_12 = arith.constant 0 : index
    %28 = vector.load %arg7[%c0_11, %c0_12] : memref<128x1xf32, #tpu.memory_space<vmem>>, vector<128x1xf32>
    %29 = vector.broadcast %28 : vector<128x1xf32> to vector<128x512xf32>
    %30 = arith.addf %27, %29 : vector<128x512xf32>
    %31 = math.tanh %30 : vector<128x512xf32>
    %c0_13 = arith.constant 0 : index
    %c0_14 = arith.constant 0 : index
    %32 = vector.load %arg8[%c0_13, %c0_14] : memref<2x128xbf16, #tpu.memory_space<vmem>>, vector<2x128xbf16>
    %33 = arith.truncf %31 : vector<128x512xf32> to vector<128x512xbf16>
    %cst_15 = arith.constant dense<0.000000e+00> : vector<2x512xf32>
    %34 = tpu.matmul %32, %33, %cst_15 {dimension_numbers = #tpu.dot_dimension_numbers<[1], [0], [0], [1], [0, 0, 1, 1], [], []>} : vector<2x128xbf16>, vector<128x512xbf16>, vector<2x512xf32> -> vector<2x512xf32>
    %c0_16 = arith.constant 0 : index
    %c0_17 = arith.constant 0 : index
    %35 = vector.load %arg9[%c0_16, %c0_17] : memref<2x1xf32, #tpu.memory_space<vmem>>, vector<2x1xf32>
    %36 = vector.broadcast %35 : vector<2x1xf32> to vector<2x512xf32>
    %37 = arith.addf %34, %36 : vector<2x512xf32>
    %c0_18 = arith.constant 0 : index
    %c0_19 = arith.constant 0 : index
    %c0_20 = arith.constant 0 : index
    %38 = vector.load %arg10[%c0_18, %c0_19, %c0_20] : memref<1x2x512xf32, #tpu.memory_space<vmem>>, vector<1x2x512xf32>
    %39 = vector.shape_cast %38 : vector<1x2x512xf32> to vector<2x512xf32>
    %40 = vector.shape_cast %37 : vector<2x512xf32> to vector<1x2x512xf32>
    tpu.vector_store %arg10[%c0_18, %c0_19, %c0_20], %40 {strides = array<i32>} : memref<1x2x512xf32, #tpu.memory_space<vmem>>, vector<1x2x512xf32>,
    return
  }
  func.func @transform_0(%arg0: i32, %arg1: i32) -> (i32, i32, i32) {
    %c0_i32 = arith.constant 0 : i32
    %c0_i32_0 = arith.constant 0 : i32
    return %arg0, %c0_i32, %arg1 : i32, i32, i32
  }
  func.func @transform_1(%arg0: i32, %arg1: i32) -> (i32, i32, i32) {
    %c0_i32 = arith.constant 0 : i32
    %c0_i32_0 = arith.constant 0 : i32
    return %arg0, %c0_i32, %arg1 : i32, i32, i32
  }
  func.func @transform_2(%arg0: i32, %arg1: i32) -> (i32, i32) {
    %c0_i32 = arith.constant 0 : i32
    %c0_i32_0 = arith.constant 0 : i32
    %c0_i32_1 = arith.constant 0 : i32
    return %c0_i32, %c0_i32_0 : i32, i32
  }
  func.func @transform_3(%arg0: i32, %arg1: i32) -> (i32, i32) {
    %c0_i32 = arith.constant 0 : i32
    %c0_i32_0 = arith.constant 0 : i32
    %c0_i32_1 = arith.constant 0 : i32
    return %c0_i32, %c0_i32_0 : i32, i32
  }
  func.func @transform_4(%arg0: i32, %arg1: i32) -> (i32, i32) {
    %c0_i32 = arith.constant 0 : i32
    %c0_i32_0 = arith.constant 0 : i32
    %c0_i32_1 = arith.constant 0 : i32
    return %c0_i32, %c0_i32_0 : i32, i32
  }
  func.func @transform_5(%arg0: i32, %arg1: i32) -> (i32, i32) {
    %c0_i32 = arith.constant 0 : i32
    %c0_i32_0 = arith.constant 0 : i32
    %c0_i32_1 = arith.constant 0 : i32
    return %c0_i32, %c0_i32_0 : i32, i32
  }
  func.func @transform_6(%arg0: i32, %arg1: i32) -> (i32, i32) {
    %c0_i32 = arith.constant 0 : i32
    %c0_i32_0 = arith.constant 0 : i32
    %c0_i32_1 = arith.constant 0 : i32
    return %c0_i32, %c0_i32_0 : i32, i32
  }
  func.func @transform_7(%arg0: i32, %arg1: i32) -> (i32, i32) {
    %c0_i32 = arith.constant 0 : i32
    %c0_i32_0 = arith.constant 0 : i32
    %c0_i32_1 = arith.constant 0 : i32
    return %c0_i32, %c0_i32_0 : i32, i32
  }
  func.func @transform_8(%arg0: i32, %arg1: i32) -> (i32, i32, i32) {
    %c0_i32 = arith.constant 0 : i32
    %c0_i32_0 = arith.constant 0 : i32
    return %arg0, %c0_i32, %arg1 : i32, i32, i32
  }
}

</mosaic_0001>

<bundles_post_ra>
// kernel: tpu_custom_call.1
= control target key start
LH: loop header
LB: loop body
LE: loop exit
PB: predicated region body
PF: predicated region fallthrough
CT: control target
= control target key end

     0   :  { %13 = vsyncpa [#allocation3], 0  ;;  %s3238_s0 = inlined_call_operand.vmem [shape: f32[2,2,512], index: 0, kind: input, shape index: {}]   ;;  %s3239_s1 = inlined_call_operand.vmem [shape: f32[2,1,512], index: 1, kind: input, shape index: {}]   ;;  %s3240_s2 = inlined_call_operand.vmem [shape: f32[128,3], index: 2, kind: input, shape index: {}]   ;;  %s3241_s3 = inlined_call_operand.vmem [shape: f32[128,1], index: 3, kind: input, shape index: {}]   ;;  %s3242_s4 = inlined_call_operand.vmem [shape: bf16[128,128], index: 4, kind: input, shape index: {}]   ;;  %s3243_s5 = inlined_call_operand.vmem [shape: f32[128,1], index: 5, kind: input, shape index: {}]   ;;  %s3244_s6 = inlined_call_operand.vmem [shape: bf16[2,128], index: 6, kind: input, shape index: {}]   ;;  %s3245_s7 = inlined_call_operand.vmem [shape: f32[2,1], index: 7, kind: input, shape index: {}]   ;;  %s3246_s8 = inlined_call_operand.hbm [shape: f32[2,2,512], index: 8, kind: output, shape index: {}]  }
   0x1   :  { %15 = vsyncpa [#allocation3 + $0x1], 0  ;;  %s2472_s27 = smov 0   ;;  %s2474_s28 = smov 0  }
   0x2   :  { %s2476_s29 = smov 0   ;;  %s2478_s30 = smov 0  }
   0x3   :  { %s2480_s9 = smov 0   ;;  %s2482_s10 = smov 0  }
   0x4 LB: > { %s1967_s11 = sadd.s32 4294967295, %s2420_s10   ;;  %s1968_s12 = sadd.s32 4294967294, %s2420_s10   ;;  %s2420_s10 = sphi %s2482_s10, %s21_s10   ;;  %s2416_s9 = sphi %s2480_s9, %s3253_s9   ;;  %s2412_s30 = sphi %s2478_s30, %s3252_s30   ;;  %s2408_s29 = sphi %s2476_s29, %s3251_s29   ;;  %s2404_s28 = sphi %s2474_s28, %s3250_s28   ;;  %s2400_s27 = sphi %s2472_s27, %s3249_s27  }
   0x5   : > { %s33_s13 = sadd.s32 1, %s2416_s9  ;;  %s224_s14 = sadd.s32 1, %s2408_s29 }
   0x6   : > { %p35_p0 = scmp.ge.s32.totalorder %s33_s13, 2  ;;  %p234_p1 = scmp.ne.s32.totalorder %s2408_s29, %s2404_s28 }
   0x7   : > { %p235_p2 = scmp.eq.s32.totalorder %s1967_s11, 1  ;;  %p240_p3 = scmp.ne.s32.totalorder %s2404_s28, %s2400_s27 }
   0x8   : > { %s3255_s13 = smov (%p35_p0, %s33_s13), 0  ;;  %p241_p5 = scmp.eq.s32.totalorder %s1968_s12, 1 }
   0x9   : > { %p2512_p4 = por %p235_p2, %p234_p1  ;;  %s219_s16 = ssub.s32 %s2416_s9, %s3255_s13 }
   0xa   : > { %p1971_p6 = scmp.ge.s32.totalorder %s2420_s10, 1  ;;  %p222_p7 = scmp.eq.s32.totalorder %s219_s16, 0 }
   0xb   : > { %p2519_p8 = por %p241_p5, %p240_p3  ;;  %p302_p9 = scmp.lt.s32.totalorder %s2420_s10, 3 }
   0xc   : > { %s2525_s18 = scalar_select %p222_p7, %s2408_s29, %s224_s14  }
   0xd   : > { %p303_p10 = pnand %p1971_p6, %p302_p9 }
   0xe   : > { %v387_v0 = vld [vmem:[%s3241_s3] sm:$0xff] (!%p303_p10)  ;;  %v2422_v2 = vmov (!%p303_p10), 0   ;;  %v2423_v3 = vmov (!%p303_p10), 2   ;;  %v388_v4 = vld [vmem:[%s3241_s3 + $0x8] sm:$0xff] (!%p303_p10)  ;;  %v374_v6 = vld [vmem:[%s3240_s2 + $0x18] sm:$0xff] (!%p303_p10)  ;;  %v2424_v10 = vmov (!%p303_p10), 1   ;;  %v484_v38 = vlaneseq (!%p303_p10) }
   0xf   : > { %306 = sbr.rel (%p303_p10) target bundleno = 874 (0x36a), region = 52  ;;  %v371_v1 = vld [vmem:[%s3240_s2] sm:$0xff] (!%p303_p10)  ;;  %2051 = vset.pattern.permute.xlu1 (!%p303_p10), %v2422_v2  ;;  %2050 = vset.pattern.permute.xlu0 (!%p303_p10), %v2423_v3  ;;  %v372_v5 = vld [vmem:[%s3240_s2 + $0x8] sm:$0xff] (!%p303_p10)  ;;  %v373_v8 = vld [vmem:[%s3240_s2 + $0x10] sm:$0xff] (!%p303_p10)  ;;  %p349_p11 = scmp.lt.s32.totalorder (!%p303_p10), %s2412_s30, 1 }
  0x10   : > { %570 = vperm.xlu1 (!%p303_p10), %2051, %v387_v0   ;;  %405 = vperm.xlu0 (!%p303_p10), %2050, %v371_v1   ;;  %v376_v7 = vld [vmem:[%s3240_s2 + $0x28] sm:$0xff] (!%p303_p10)  ;;  %v2556_v9 = vld [vmem:[%s3240_s2 + $0x38] sm:$0xff] (!%p303_p10)  ;;  %v375_v16 = vld [vmem:[%s3240_s2 + $0x20] sm:$0xff] (!%p303_p10)  ;;  %v2679_v41 = vshrl.u32 (!%p303_p10), %v484_v38, 7  ;;  %s1990_s26 = sshll.u32 (!%p303_p10), %s2412_s30, 7 }
  0x11   : > { %1457 = vmatprep.mubr.bf16.mxu0 (!%p303_p10), %v2422_v2  ;;  %1570 = vmatprep.mubr.bf16.mxu1 (!%p303_p10), %v2422_v2  ;;  %v2563_v11 = vld [vmem:[%s3240_s2 + $0x48] sm:$0xff] (!%p303_p10)  ;;  %v2569_v12 = vld [vmem:[%s3240_s2 + $0x58] sm:$0xff] (!%p303_p10)  ;;  %v389_v17 = vld [vmem:[%s3241_s3 + $0x10] sm:$0xff] (!%p303_p10)  ;;  %s3191_s19 = scalar_lea.hbm (!%p303_p10), %s3246_s8, %s1990_s26 }
  0x12   : > { %v390_v13 = vld [vmem:[%s3241_s3 + $0x18] sm:$0xff] (!%p303_p10)  ;;  %v2578_v14 = vld [vmem:[%s3240_s2 + $0x68] sm:$0xff] (!%p303_p10)  ;;  %v391_v18 = vld [vmem:[%s3241_s3 + $0x20] sm:$0xff] (!%p303_p10)  ;;  %v486_v45 = vsub.s32 (!%p303_p10), 0, %v2679_v41  ;;  %v787_v46 = vsub.s32 (!%p303_p10), 4, %v2679_v41  ;;  %v494_v48 = vsub.s32 (!%p303_p10), 2, %v2679_v41 }
  0x13   : > { %v386_v15 = vld [vmem:[%s3240_s2 + $0x78] sm:$0xff] (!%p303_p10)  ;;  %v392_v19 = vld [vmem:[%s3241_s3 + $0x28] sm:$0xff] (!%p303_p10)  ;;  %v393_v20 = vld [vmem:[%s3241_s3 + $0x30] sm:$0xff] (!%p303_p10)  ;;  %v791_v50 = vsub.s32 (!%p303_p10), 6, %v2679_v41  ;;  %v490_v52 = vsub.s32 (!%p303_p10), 1, %v2679_v41  ;;  %v498_v53 = vsub.s32 (!%p303_p10), 3, %v2679_v41 }
  0x14   : > { %575 = vperm.xlu1 (!%p303_p10), %2051, %v388_v4   ;;  %410 = vperm.xlu0 (!%p303_p10), %2050, %v372_v5   ;;  %v377_v21 = vld [vmem:[%s3240_s2 + $0x30] sm:$0xff] (!%p303_p10)  ;;  %v395_v22 = vld [vmem:[%s3241_s3 + $0x40] sm:$0xff] (!%p303_p10)  ;;  %v394_v23 = vld [vmem:[%s3241_s3 + $0x38] sm:$0xff] (!%p303_p10)  ;;  %v1015_v59 = vsub.s32 (!%p303_p10), 5, %v2679_v41  ;;  %v1019_v60 = vsub.s32 (!%p303_p10), 7, %v2679_v41 }
  0x15   : > { %v397_v24 = vld [vmem:[%s3241_s3 + $0x50] sm:$0xff] (!%p303_p10)  ;;  %v399_v25 = vld [vmem:[%s3241_s3 + $0x60] sm:$0xff] (!%p303_p10)  ;;  %v396_v28 = vld [vmem:[%s3241_s3 + $0x48] sm:$0xff] (!%p303_p10) }
  0x16   : > { %v379_v26 = vld [vmem:[%s3240_s2 + $0x40] sm:$0xff]  ;;  %v401_v27 = vld [vmem:[%s3241_s3 + $0x70] sm:$0xff]  ;;  %v398_v30 = vld [vmem:[%s3241_s3 + $0x58] sm:$0xff]  ;;  %s350_s14 = scalar_select %p349_p11, %s2412_s30, 1 }
  0x17   : > { %v381_v29 = vld [vmem:[%s3240_s2 + $0x50] sm:$0xff]  ;;  %v2654_v31 = vld [vmem:[%s3240_s2 + $0x60] sm:$0xff]  ;;  %v400_v40 = vld [vmem:[%s3241_s3 + $0x68] sm:$0xff]  ;;  %s2426_s30 = smov [#allocation2]  }
  0x18   : > { %717 = vperm.xlu1 %2051, %v372_v5   ;;  %420 = vperm.xlu0 %2050, %v374_v6   ;;  %s1989_s16 = sshll.u32 %s350_s14, 3  ;;  %s1975_s21 = sshll.u32 %s350_s14, 2  ;;  %v2706_v57 = vld [vmem:[%s3240_s2 + $0x70] sm:$0xff] }
  0x19   : > { %s356_s24 = scalar_lea.vmem %s3238_s0, %s1989_s16  ;;  %s365_s11 = scalar_lea.vmem %s3239_s1, %s1975_s21 }
  0x1a   : > { %v369_v43 = vld [vmem:[%s356_s24] sm:$0xff]  ;;  %s345_s24 = sand.u32 1, %s2404_s28   ;;  %s2346_s22 = sshll.u32 %s2426_s30, 4  ;;  %s2347_s22 = int_to_ptr.vmem [resolvable:$false] %s2346_s22 }
  0x1b   : > { %v370_v49 = vld [vmem:[%s365_s11] sm:$0xf]  ;;  %v780_v51 = vrot.slane %v369_v43, %v486_v45  ;;  %v784_v55 = vrot.slane %v369_v43, %v494_v48  ;;  %v788_v56 = vrot.slane %v369_v43, %v787_v46  ;;  %v792_v62 = vrot.slane %v369_v43, %v791_v50  ;;  %s1972_s25 = sshll.u32 %s345_s24, 3  ;;  %s1860_s20 = scalar_lea.sflag [#allocation3], %s345_s24 }
  0x1c   : > { %2052 = vset.pattern.permute.xlu1 %v2423_v3  ;;  %430 = vperm.xlu0 %2050, %v376_v7   ;;  %v2708_v58 = vrot.slane %v370_v49, %v486_v45  ;;  %v1008_v0 = vrot.slane %v369_v43, %v490_v52  ;;  %v2715_v4 = vrot.slane %v370_v49, %v490_v52  ;;  %s347_s11 = scalar_lea.vmem [#allocation2], %s1972_s25  ;;  %s2348_s23 = scalar_lea.vmem %s2347_s22, 256 }
  0x1d   : > { %415 = vperm.xlu1 %2052, %v373_v8   ;;  %v2712_v63 = vrot.slane %v780_v51, %v486_v45  ;;  %s1876_s12 = sshll.u32 %s347_s11, 4  ;;  %s3193_s12 = int_to_ptr.vmem [resolvable:$true] %s1876_s12 }
  0x1e   : > { %s2342_s21 = scalar_lea.vmem %s3193_s12, 128  ;;  %p2349_p1 = scmp.lt.s32.totalorder %s3193_s12, %s2347_s22 }
  0x1f   : > { %p2343_p12 = scmp.ne.s32.totalorder %s3193_s12, %s2342_s21  ;;  %p2350_p2 = scmp.lt.s32.totalorder %s2348_s23, %s2342_s21 }
  0x20   : > { %440 = vperm.xlu0 %2050, %v2556_v9  }
  0x21   : > { %2053 = vset.pattern.permute.xlu1 %v2424_v10  ;;  %p2344_p13 = pnand %p2343_p12, %p2512_p4  ;;  %p2351_p3 = por %p2350_p2, %p2349_p1 }
  0x22   : > { %942 = vperm.xlu1 %2053, %v371_v1  }
  0x23   : > { %p2345_p0 = pneg %p2344_p13 }
  0x24   : > { %450 = vperm.xlu0 %2050, %v2563_v11  }
  0x25   : > { %p2352_p5 = pnand %p2351_p3, %p2345_p0 }
  0x26   : > { %946 = vperm.xlu1 %2053, %v372_v5   ;;  %v2717_v5 = vrot.slane %v370_v49, %v494_v48 }
  0x28   : > { %460 = vperm.xlu0 %2050, %v2569_v12  }
  0x2a   : > { %2054 = vset.pattern.permute.xlu1 %v2422_v2 }
  0x2b   : > { %585 = vperm.xlu1 %2054, %v390_v13   ;;  %v1016_v13 = vrot.slane %v369_v43, %v1015_v59 }
  0x2c   : > { %470 = vperm.xlu0 %2050, %v2578_v14  }
  0x2d   : > { %v2764_v38 = vrot.slane %v1016_v13, %v490_v52 }
  0x2f   : > { %721 = vperm.xlu1 %2054, %v373_v8  }
  0x30   : > { %480 = vperm.xlu0 %2050, %v386_v15  }
  0x33   : > { %2055 = vset.pattern.permute.xlu1 %v2423_v3 }
  0x34   : > { %425 = vperm.xlu1 %2055, %v375_v16   ;;  %2071 = vset.pattern.permute.xlu0 %v2422_v2 }
  0x35   : > { %713 = vperm.xlu0 %2071, %v371_v1   ;;  %v1012_v1 = vrot.slane %v369_v43, %v498_v53 }
  0x38   : > { %2056 = vset.pattern.permute.xlu1 %v2424_v10 }
  0x39   : > { %950 = vperm.xlu1 %2056, %v373_v8   ;;  %580 = vperm.xlu0 %2071, %v389_v17  }
  0x3d   : > { %954 = vperm.xlu1 %2056, %v374_v6   ;;  %725 = vperm.xlu0 %2071, %v374_v6   ;;  %v2719_v6 = vrot.slane %v370_v49, %v498_v53 }
  0x41   : > { %2057 = vset.pattern.permute.xlu1 %v2422_v2  ;;  %590 = vperm.xlu0 %2071, %v391_v18   ;;  %v2738_v18 = vrot.slane %v1008_v0, %v490_v52 }
  0x42   : > { %595 = vperm.xlu1 %2057, %v392_v19   ;;  %v2740_v19 = vrot.slane %v1012_v1, %v490_v52 }
  0x45   : > { %733 = vperm.xlu0 %2071, %v376_v7  }
  0x46   : > { %729 = vperm.xlu1 %2057, %v375_v16  }
  0x49   : > { %600 = vperm.xlu0 %2071, %v393_v20  }
  0x4a   : > { %2058 = vset.pattern.permute.xlu1 %v2423_v3 }
  0x4b   : > { %435 = vperm.xlu1 %2058, %v377_v21  }
  0x4d   : > { %741 = vperm.xlu0 %2071, %v2556_v9  }
  0x4f   : > { %2059 = vset.pattern.permute.xlu1 %v2424_v10 }
  0x50   : > { %958 = vperm.xlu1 %2059, %v375_v16   ;;  %v2734_v16 = vrot.slane %v792_v62, %v486_v45 }
  0x51   : > { %610 = vperm.xlu0 %2071, %v395_v22  }
  0x54   : > { %962 = vperm.xlu1 %2059, %v376_v7  }
  0x55   : > { %749 = vperm.xlu0 %2071, %v2563_v11  }
  0x58   : > { %2060 = vset.pattern.permute.xlu1 %v2422_v2 }
  0x59   : > { %605 = vperm.xlu1 %2060, %v394_v23   ;;  %620 = vperm.xlu0 %2071, %v397_v24  }
  0x5d   : > { %737 = vperm.xlu1 %2060, %v377_v21   ;;  %757 = vperm.xlu0 %2071, %v2569_v12  }
  0x61   : > { %2061 = vset.pattern.permute.xlu1 %v2423_v3  ;;  %630 = vperm.xlu0 %2071, %v399_v25  }
  0x62   : > { %445 = vperm.xlu1 %2061, %v379_v26  }
  0x65   : > { %765 = vperm.xlu0 %2071, %v2578_v14  }
  0x66   : > { %2062 = vset.pattern.permute.xlu1 %v2424_v10 }
  0x67   : > { %966 = vperm.xlu1 %2062, %v377_v21  }
  0x69   : > { %640 = vperm.xlu0 %2071, %v401_v27  }
  0x6b   : > { %970 = vperm.xlu1 %2062, %v2556_v9   ;;  %v2726_v9 = vrot.slane %v784_v55, %v486_v45 }
  0x6d   : > { %773 = vperm.xlu0 %2071, %v386_v15  }
  0x6f   : > { %2063 = vset.pattern.permute.xlu1 %v2422_v2 }
  0x70   : > { %615 = vperm.xlu1 %2063, %v396_v28  }
  0x71   : > { %2075 = vset.pattern.permute.xlu0 %v2424_v10 }
  0x72   : > { %1002 = vperm.xlu0 %2075, %v386_v15   ;;  %v1020_v15 = vrot.slane %v369_v43, %v1019_v60 }
  0x74   : > { %745 = vperm.xlu1 %2063, %v379_v26  }
  0x76   : > { %2077 = vset.pattern.permute.xlu0 %v2422_v2 }
  0x78   : > { %2064 = vset.pattern.permute.xlu1 %v2423_v3 }
  0x79   : > { %455 = vperm.xlu1 %2064, %v381_v29  }
  0x7d   : > { %2065 = vset.pattern.permute.xlu1 %v2424_v10 }
  0x7e   : > { %974 = vperm.xlu1 %2065, %v379_v26  }
  0x82   : > { %978 = vperm.xlu1 %2065, %v2563_v11   ;;  %v2728_v11 = vrot.slane %v788_v56, %v486_v45 }
  0x86   : > { %2066 = vset.pattern.permute.xlu1 %v2422_v2 }
  0x87   : > { %625 = vperm.xlu1 %2066, %v398_v30  }
  0x8b   : > { %753 = vperm.xlu1 %2066, %v381_v29  }
  0x8f   : > { %v2656_v32 = vpop.permute.xlu1 %570  ;;  %2067 = vset.pattern.permute.xlu1 %v2423_v3  ;;  %v2659_v33 = vpop.permute.xlu0 %405 }
  0x90   : > { %465 = vperm.xlu1 %2067, %v2654_v31   ;;  %v505_v21 = vmul.f32 %v2715_v4, %v2659_v33  ;;  %v506_v22 = vmul.f32 %v2717_v5, %v2659_v33  ;;  %v507_v23 = vmul.f32 %v2719_v6, %v2659_v33 }
  0x92   : > { %v650_v49 = vadd.f32 %v2656_v32, %v506_v22  ;;  %v651_v50 = vadd.f32 %v2656_v32, %v507_v23 }
  0x93   : > { %v2663_v34 = vpop.permute.xlu1 %575  ;;  %v2665_v35 = vpop.permute.xlu0 %410 }
  0x94   : > { %2068 = vset.pattern.permute.xlu1 %v2424_v10  ;;  %v508_v8 = vmul.f32 %v2708_v58, %v2665_v35  ;;  %v510_v24 = vmul.f32 %v2717_v5, %v2665_v35  ;;  %v511_v26 = vmul.f32 %v2719_v6, %v2665_v35 }
  0x95   : > { %982 = vperm.xlu1 %2068, %v381_v29  }
  0x96   : > { %v652_v27 = vadd.f32 %v2663_v34, %v508_v8  ;;  %v654_v51 = vadd.f32 %v2663_v34, %v510_v24  ;;  %v655_v53 = vadd.f32 %v2663_v34, %v511_v26 }
  0x97   : > { %v2669_v36 = vpop.permute.xlu1 %717  ;;  %v2671_v37 = vpop.permute.xlu0 %420 }
  0x98   : > { %v817_v17 = vmul.f32 %v2712_v63, %v2669_v36  ;;  %v818_v28 = vmul.f32 %v2726_v9, %v2669_v36  ;;  %v820_v43 = vmul.f32 %v2734_v16, %v2669_v36  ;;  %v516_v59 = vmul.f32 %v2708_v58, %v2671_v37 }
  0x99   : > { %986 = vperm.xlu1 %2068, %v2569_v12   ;;  %v509_v12 = vmul.f32 %v2715_v4, %v2665_v35  ;;  %v819_v35 = vmul.f32 %v2728_v11, %v2669_v36  ;;  %v517_v60 = vmul.f32 %v2715_v4, %v2671_v37  ;;  %v519_v62 = vmul.f32 %v2719_v6, %v2671_v37 }
  0x9a   : > { %v881_v45 = vadd.f32 %v817_v17, %v652_v27 }
  0x9b   : > { %v2674_v39 = vpop.permute.xlu0 %430  ;;  %v883_v0 = vadd.f32 %v819_v35, %v654_v51 }
  0x9c   : > { %v2684_v42 = vpop.permute.xlu1 %415 }
  0x9d   : > { %2069 = vset.pattern.permute.xlu1 %v2422_v2  ;;  %v514_v13 = vmul.f32 %v2717_v5, %v2684_v42 }
  0x9e   : > { %635 = vperm.xlu1 %2069, %v400_v40   ;;  %v2766_v40 = vrot.slane %v1020_v15, %v490_v52 }
  0x9f   : > { %v2690_v44 = vpop.permute.xlu0 %440 }
  0xa1   : > { %v2694_v47 = vpop.permute.xlu1 %942 }
  0xa2   : > { %761 = vperm.xlu1 %2069, %v2654_v31   ;;  %v1042_v17 = vmul.f32 %v2740_v19, %v2694_v47  ;;  %v1043_v27 = vmul.f32 %v2764_v38, %v2694_v47 }
  0xa3   : > { %v2701_v54 = vpop.permute.xlu0 %450 }
  0xa5   : > { %v947_v61 = vpop.permute.xlu1 %946 }
  0xa6   : > { %2070 = vset.pattern.permute.xlu1 %v2423_v3  ;;  %v504_v3 = vmul.f32 %v2708_v58, %v2659_v33  ;;  %v1045_v29 = vmul.f32 %v2738_v18, %v947_v61  ;;  %v653_v33 = vadd.f32 %v2663_v34, %v509_v12  ;;  %v1046_v46 = vmul.f32 %v2740_v19, %v947_v61 }
  0xa7   : > { %475 = vperm.xlu1 %2070, %v2706_v57   ;;  %v2722_v7 = vpop.permute.xlu0 %460  ;;  %v1047_v56 = vmul.f32 %v2764_v38, %v947_v61  ;;  %v884_v34 = vadd.f32 %v820_v43, %v655_v53  ;;  %v1048_v1 = vmul.f32 %v2766_v40, %v947_v61  ;;  %v513_v12 = vmul.f32 %v2715_v4, %v2684_v42 }
  0xa8   : > { %v648_v30 = vadd.f32 %v2656_v32, %v504_v3  ;;  %v882_v55 = vadd.f32 %v818_v28, %v653_v33  ;;  %v1109_v36 = vadd.f32 %v1045_v29, %v881_v45  ;;  %v512_v3 = vmul.f32 %v2708_v58, %v2684_v42 }
  0xa9   : > { %v1041_v61 = vmul.f32 %v2738_v18, %v2694_v47  ;;  %v1044_v28 = vmul.f32 %v2766_v40, %v2694_v47  ;;  %v1112_v29 = vadd.f32 %v1048_v1, %v884_v34 }
  0xaa   : > { %v2742_v20 = vpop.permute.xlu1 %585  ;;  %v1110_v8 = vadd.f32 %v1046_v46, %v882_v55  ;;  %2086 = vtanh.f32 %v1109_v36 }
  0xab   : > { %2072 = vset.pattern.permute.xlu1 %v2424_v10  ;;  %v2753_v25 = vpop.permute.xlu0 %470  ;;  %v660_v46 = vadd.f32 %v2742_v20, %v516_v59  ;;  %v661_v51 = vadd.f32 %v2742_v20, %v517_v60 }
  0xac   : > { %990 = vperm.xlu1 %2072, %v2654_v31   ;;  %v649_v31 = vadd.f32 %v2656_v32, %v505_v21  ;;  %v518_v32 = vmul.f32 %v2717_v5, %v2671_v37  ;;  %v515_v37 = vmul.f32 %v2719_v6, %v2684_v42  ;;  %v1111_v21 = vadd.f32 %v1047_v56, %v883_v0 }
  0xad   : > { %2088 = vtanh.f32 %v1110_v8 }
  0xae   : > { %v722_v48 = vpop.permute.xlu1 %721  ;;  %2090 = vtanh.f32 %v1111_v21  ;;  %v662_v53 = vadd.f32 %v2742_v20, %v518_v32 }
  0xaf   : > { %v2777_v52 = vpop.permute.xlu0 %480  ;;  %v821_v36 = vmul.f32 %v2712_v63, %v722_v48 }
  0xb0   : > { %994 = vperm.xlu1 %2072, %v2578_v14   ;;  %v402_v14 = vld [vmem:[%s3241_s3 + $0x78] sm:$0xff] }
  0xb3   : > { %v2802_v15 = vpop.permute.xlu1 %425 }
  0xb4   : > { %2073 = vset.pattern.permute.xlu1 %v2422_v2  ;;  %v714_v22 = vpop.permute.xlu0 %713 }
  0xb5   : > { %v813_v23 = vmul.f32 %v2712_v63, %v714_v22  ;;  %v814_v24 = vmul.f32 %v2726_v9, %v714_v22  ;;  %v815_v26 = vmul.f32 %v2728_v11, %v714_v22  ;;  %v816_v42 = vmul.f32 %v2734_v16, %v714_v22  ;;  %645 = vperm.xlu1 %2073, %v402_v14  }
  0xb7   : > { %v877_v33 = vadd.f32 %v813_v23, %v648_v30  ;;  %v878_v35 = vadd.f32 %v814_v24, %v649_v31  ;;  %v879_v43 = vadd.f32 %v815_v26, %v650_v49  ;;  %v880_v45 = vadd.f32 %v816_v42, %v651_v50 }
  0xb8   : > { %v951_v55 = vpop.permute.xlu1 %950  ;;  %v581_v56 = vpop.permute.xlu0 %580  ;;  %v822_v30 = vmul.f32 %v2726_v9, %v722_v48  ;;  %v823_v31 = vmul.f32 %v2728_v11, %v722_v48  ;;  %v824_v49 = vmul.f32 %v2734_v16, %v722_v48 }
  0xb9   : > { %v1105_v0 = vadd.f32 %v1041_v61, %v877_v33  ;;  %v1106_v14 = vadd.f32 %v1042_v17, %v878_v35  ;;  %v1107_v47 = vadd.f32 %v1043_v27, %v879_v43  ;;  %769 = vperm.xlu1 %2073, %v2706_v57   ;;  %v1108_v50 = vadd.f32 %v1044_v28, %v880_v45  ;;  %v2828_v48 = vpop.eup %2086 }
  0xba   : > { %v656_v59 = vadd.f32 %v581_v56, %v512_v3  ;;  %v657_v60 = vadd.f32 %v581_v56, %v513_v12  ;;  %v658_v32 = vadd.f32 %v581_v56, %v514_v13  ;;  %v1049_v34 = vmul.f32 %v2738_v18, %v951_v55  ;;  %v2834_v42 = vpop.eup %2088 }
  0xbb   : > { %2092 = vtanh.f32 %v1105_v0  ;;  %v1050_v1 = vmul.f32 %v2740_v19, %v951_v55  ;;  %v659_v8 = vadd.f32 %v581_v56, %v515_v37  ;;  %v663_v3 = vadd.f32 %v2742_v20, %v519_v62  ;;  %v2091_v43 = vpop.eup %2090 }
  0xbc   : > { %2094 = vtanh.f32 %v1106_v14  ;;  %v955_v61 = vpop.permute.xlu1 %954  ;;  %v885_v17 = vadd.f32 %v821_v36, %v656_v59  ;;  %v886_v21 = vadd.f32 %v822_v30, %v657_v60  ;;  %v887_v22 = vadd.f32 %v823_v31, %v658_v32  ;;  %v726_v23 = vpop.permute.xlu0 %725 }
  0xbd   : > { %2096 = vtanh.f32 %v1107_v47  ;;  %2074 = vset.pattern.permute.xlu1 %v2424_v10  ;;  %v1051_v12 = vmul.f32 %v2764_v38, %v951_v55  ;;  %v888_v13 = vadd.f32 %v824_v49, %v659_v8  ;;  %v1052_v37 = vmul.f32 %v2766_v40, %v951_v55 }
  0xbe   : > { %2098 = vtanh.f32 %v1108_v50  ;;  %998 = vperm.xlu1 %2074, %v2706_v57   ;;  %v1113_v24 = vadd.f32 %v1049_v34, %v885_v17  ;;  %v1114_v26 = vadd.f32 %v1050_v1, %v886_v21  ;;  %v1053_v10 = vmul.f32 %v2738_v18, %v955_v61 }
  0xbf   : > { %2100 = vtanh.f32 %v1112_v29  ;;  %v1115_v27 = vadd.f32 %v1051_v12, %v887_v22  ;;  %v825_v28 = vmul.f32 %v2712_v63, %v726_v23  ;;  %v826_v20 = vmul.f32 %v2726_v9, %v726_v23 }
  0xc0   : > { %v1116_v62 = vadd.f32 %v1052_v37, %v888_v13  ;;  %v1054_v33 = vmul.f32 %v2740_v19, %v955_v61  ;;  %v827_v35 = vmul.f32 %v2728_v11, %v726_v23  ;;  %v828_v57 = vmul.f32 %v2734_v16, %v726_v23  ;;  %v591_v31 = vpop.permute.xlu0 %590 }
  0xc1   : > { %v596_v29 = vpop.permute.xlu1 %595  ;;  %2102 = vtanh.f32 %v1113_v24  ;;  %v1055_v45 = vmul.f32 %v2764_v38, %v955_v61  ;;  %v889_v55 = vadd.f32 %v825_v28, %v660_v46  ;;  %v890_v56 = vadd.f32 %v826_v20, %v661_v51 }
  0xc2   : > { %2076 = vset.pattern.permute.xlu1 %v2422_v2  ;;  %2104 = vtanh.f32 %v1114_v26  ;;  %v1056_v36 = vmul.f32 %v2766_v40, %v955_v61  ;;  %v891_v0 = vadd.f32 %v827_v35, %v662_v53  ;;  %v892_v14 = vadd.f32 %v828_v57, %v663_v3 }
  0xc3   : > { %2106 = vtanh.f32 %v1115_v27  ;;  %v1117_v47 = vadd.f32 %v1053_v10, %v889_v55  ;;  %v1118_v30 = vadd.f32 %v1054_v33, %v890_v56  ;;  %v524_v51 = vmul.f32 %v2708_v58, %v2674_v39 }
  0xc4   : > { %2108 = vtanh.f32 %v1116_v62  ;;  %v1119_v50 = vadd.f32 %v1055_v45, %v891_v0  ;;  %v1120_v59 = vadd.f32 %v1056_v36, %v892_v14  ;;  %v525_v34 = vmul.f32 %v2715_v4, %v2674_v39  ;;  %v734_v12 = vpop.permute.xlu0 %733 }
  0xc5   : > { %v2093_v49 = vpop.eup %2092  ;;  %v730_v60 = vpop.permute.xlu1 %729  ;;  %2110 = vtanh.f32 %v1117_v47  ;;  %v526_v1 = vmul.f32 %v2717_v5, %v2674_v39  ;;  %v527_v8 = vmul.f32 %v2719_v6, %v2674_v39  ;;  %v520_v61 = vmul.f32 %v2708_v58, %v2802_v15 }
  0xc6   : > { %v2095_v32 = vpop.eup %2094  ;;  %2112 = vtanh.f32 %v1118_v30  ;;  %v521_v21 = vmul.f32 %v2715_v4, %v2802_v15  ;;  %v522_v22 = vmul.f32 %v2717_v5, %v2802_v15  ;;  %v523_v23 = vmul.f32 %v2719_v6, %v2802_v15 }
  0xc7   : > { %v2097_v46 = vpop.eup %2096  ;;  %2114 = vtanh.f32 %v1119_v50  ;;  %v664_v3 = vadd.f32 %v591_v31, %v520_v61  ;;  %v829_v13 = vmul.f32 %v2712_v63, %v730_v60  ;;  %v830_v39 = vmul.f32 %v2726_v9, %v730_v60 }
  0xc8   : > { %v2099_v53 = vpop.eup %2098  ;;  %2116 = vtanh.f32 %v1120_v59  ;;  %v831_v37 = vmul.f32 %v2728_v11, %v730_v60  ;;  %v1250_v26 = vpack.c.bf16 %v2834_v42, %v2095_v32  ;;  %v1249_v10 = vpack.c.bf16 %v2828_v48, %v2093_v49 }
  0xc9   : > { %v2101_v17 = vpop.eup %2100  ;;  %v1251_v28 = vpack.c.bf16 %v2091_v43, %v2097_v46  ;;  %v665_v62 = vadd.f32 %v591_v31, %v521_v21  ;;  %v666_v15 = vadd.f32 %v591_v31, %v522_v22  ;;  %v667_v33 = vadd.f32 %v591_v31, %v523_v23 }
  0xca   : > { %v2864_v24 = vpop.permute.xlu1 %435  ;;  %v1252_v27 = vpack.c.bf16 %v2101_v17, %v2099_v53  ;;  %v668_v35 = vadd.f32 %v596_v29, %v524_v51  ;;  %v833_v45 = vmul.f32 %v2712_v63, %v734_v12  ;;  %v834_v55 = vmul.f32 %v2726_v9, %v734_v12  ;;  %1425 = vmatprep.subr.bf16.mxu0 %v1250_v26 }
  0xcb   : > { %v2103_v20 = vpop.eup %2102  ;;  %v832_v56 = vmul.f32 %v2734_v16, %v730_v60  ;;  %v669_v42 = vadd.f32 %v596_v29, %v525_v34  ;;  %v670_v0 = vadd.f32 %v596_v29, %v526_v1  ;;  %v671_v14 = vadd.f32 %v596_v29, %v527_v8  ;;  %1426 = vmatpush1.bf16.msra.mxu0 %v1249_v10 }
  0xcc   : > { %v2105_v57 = vpop.eup %2104  ;;  %1538 = vmatprep.subr.bf16.mxu1 %v1252_v27  ;;  %v835_v43 = vmul.f32 %v2728_v11, %v734_v12  ;;  %v893_v47 = vadd.f32 %v829_v13, %v664_v3  ;;  %v894_v30 = vadd.f32 %v830_v39, %v665_v62  ;;  %v895_v31 = vadd.f32 %v831_v37, %v666_v15 }
  0xcd   : > { %v2107_v36 = vpop.eup %2106  ;;  %1539 = vmatpush1.bf16.msra.mxu1 %v1251_v28  ;;  %v836_v29 = vmul.f32 %v2734_v16, %v734_v12  ;;  %v897_v34 = vadd.f32 %v833_v45, %v668_v35  ;;  %v898_v53 = vadd.f32 %v834_v55, %v669_v42  ;;  %v896_v1 = vadd.f32 %v832_v56, %v667_v33  ;;  %v601_v55 = vpop.permute.xlu0 %600 }
  0xce   : > { %v2109_v48 = vpop.eup %2108  ;;  %v899_v3 = vadd.f32 %v835_v43, %v670_v0  ;;  %v528_v42 = vmul.f32 %v2708_v58, %v2864_v24  ;;  %v530_v43 = vmul.f32 %v2717_v5, %v2864_v24 }
  0xcf   : > { %v959_v49 = vpop.permute.xlu1 %958  ;;  %v2111_v50 = vpop.eup %2110  ;;  %v900_v28 = vadd.f32 %v836_v29, %v671_v14 }
  0xd0   : > { %v1057_v59 = vmul.f32 %v2738_v18, %v959_v49  ;;  %v1058_v60 = vmul.f32 %v2740_v19, %v959_v49  ;;  %v1059_v32 = vmul.f32 %v2764_v38, %v959_v49  ;;  %v1060_v46 = vmul.f32 %v2766_v40, %v959_v49  ;;  %v2113_v51 = vpop.eup %2112 }
  0xd1   : > { %v2115_v8 = vpop.eup %2114  ;;  %v1253_v22 = vpack.c.bf16 %v2111_v50, %v2103_v20  ;;  %v1254_v39 = vpack.c.bf16 %v2113_v51, %v2105_v57  ;;  %v742_v0 = vpop.permute.xlu0 %741  ;;  %v533_v50 = vmul.f32 %v2715_v4, %v2690_v44 }
  0xd2   : > { %v1121_v61 = vadd.f32 %v1057_v59, %v893_v47  ;;  %v1122_v17 = vadd.f32 %v1058_v60, %v894_v30  ;;  %v1123_v21 = vadd.f32 %v1059_v32, %v895_v31  ;;  %v2117_v23 = vpop.eup %2116  ;;  %v1124_v13 = vadd.f32 %v1060_v46, %v896_v1 }
  0xd3   : > { %v1255_v37 = vpack.c.bf16 %v2115_v8, %v2107_v36  ;;  %v963_v26 = vpop.permute.xlu1 %962  ;;  %v1256_v27 = vpack.c.bf16 %v2117_v23, %v2109_v48  ;;  %1427 = vmatprep.subr.bf16.mxu0 %v1254_v39  ;;  %v529_v48 = vmul.f32 %v2715_v4, %v2864_v24  ;;  %v531_v47 = vmul.f32 %v2719_v6, %v2864_v24 }
  0xd4   : > { %2118 = vtanh.f32 %v1121_v61  ;;  %v1061_v10 = vmul.f32 %v2738_v18, %v963_v26  ;;  %v1062_v12 = vmul.f32 %v2740_v19, %v963_v26  ;;  %v1063_v62 = vmul.f32 %v2764_v38, %v963_v26  ;;  %1428 = vmatpush1.bf16.msra.mxu0 %v1253_v22 }
  0xd5   : > { %2120 = vtanh.f32 %v1122_v17  ;;  %v1064_v15 = vmul.f32 %v2766_v40, %v963_v26  ;;  %1540 = vmatprep.subr.bf16.mxu1 %v1256_v27  ;;  %v532_v31 = vmul.f32 %v2708_v58, %v2690_v44  ;;  %v534_v59 = vmul.f32 %v2717_v5, %v2690_v44 }
  0xd6   : > { %2122 = vtanh.f32 %v1123_v21  ;;  %v1125_v20 = vadd.f32 %v1061_v10, %v897_v34  ;;  %v1126_v33 = vadd.f32 %v1062_v12, %v898_v53  ;;  %1541 = vmatpush1.bf16.msra.mxu1 %v1255_v37  ;;  %v1127_v35 = vadd.f32 %v1063_v62, %v899_v3 }
  0xd7   : > { %2124 = vtanh.f32 %v1124_v13  ;;  %v1128_v57 = vadd.f32 %v1064_v15, %v900_v28  ;;  %v535_v60 = vmul.f32 %v2719_v6, %v2690_v44  ;;  %v841_v32 = vmul.f32 %v2712_v63, %v742_v0 }
  0xd8   : > { %2126 = vtanh.f32 %v1125_v20  ;;  %v606_v45 = vpop.permute.xlu1 %605  ;;  %v672_v24 = vadd.f32 %v601_v55, %v528_v42  ;;  %v673_v8 = vadd.f32 %v601_v55, %v529_v48  ;;  %v674_v61 = vadd.f32 %v601_v55, %v530_v43 }
  0xd9   : > { %2128 = vtanh.f32 %v1126_v33  ;;  %v675_v17 = vadd.f32 %v601_v55, %v531_v47  ;;  %v842_v21 = vmul.f32 %v2726_v9, %v742_v0  ;;  %v676_v44 = vadd.f32 %v606_v45, %v532_v31 }
  0xda   : > { %2130 = vtanh.f32 %v1127_v35  ;;  %v843_v23 = vmul.f32 %v2728_v11, %v742_v0  ;;  %v677_v37 = vadd.f32 %v606_v45, %v533_v50  ;;  %v678_v26 = vadd.f32 %v606_v45, %v534_v59 }
  0xdb   : > { %2132 = vtanh.f32 %v1128_v57  ;;  %v905_v47 = vadd.f32 %v841_v32, %v676_v44 }
  0xdc   : > { %v738_v56 = vpop.permute.xlu1 %737  ;;  %v907_v31 = vadd.f32 %v843_v23, %v678_v26  ;;  %v541_v26 = vmul.f32 %v2715_v4, %v2701_v54 }
  0xdd   : > { %v837_v29 = vmul.f32 %v2712_v63, %v738_v56  ;;  %v838_v34 = vmul.f32 %v2726_v9, %v738_v56  ;;  %v839_v53 = vmul.f32 %v2728_v11, %v738_v56  ;;  %v840_v3 = vmul.f32 %v2734_v16, %v738_v56 }
  0xde   : > { %v2119_v36 = vpop.eup %2118  ;;  %v679_v56 = vadd.f32 %v606_v45, %v535_v60 }
  0xdf   : > { %v2121_v14 = vpop.eup %2120  ;;  %v901_v12 = vadd.f32 %v837_v29, %v672_v24  ;;  %v902_v28 = vadd.f32 %v838_v34, %v673_v8  ;;  %v903_v62 = vadd.f32 %v839_v53, %v674_v61  ;;  %v904_v42 = vadd.f32 %v840_v3, %v675_v17 }
  0xe0   : > { %v2123_v30 = vpop.eup %2122  ;;  %v540_v3 = vmul.f32 %v2708_v58, %v2701_v54 }
  0xe1   : > { %v2125_v49 = vpop.eup %2124  ;;  %v2898_v46 = vpop.permute.xlu1 %445 }
  0xe2   : > { %v2127_v51 = vpop.eup %2126  ;;  %v538_v44 = vmul.f32 %v2717_v5, %v2898_v46 }
  0xe3   : > { %v2129_v1 = vpop.eup %2128  ;;  %v1257_v13 = vpack.c.bf16 %v2127_v51, %v2119_v36  ;;  %v844_v36 = vmul.f32 %v2734_v16, %v742_v0 }
  0xe4   : > { %v2131_v22 = vpop.eup %2130  ;;  %v1258_v27 = vpack.c.bf16 %v2129_v1, %v2121_v14  ;;  %v611_v1 = vpop.permute.xlu0 %610 }
  0xe5   : > { %v2133_v39 = vpop.eup %2132  ;;  %v1259_v10 = vpack.c.bf16 %v2131_v22, %v2123_v30  ;;  %v906_v30 = vadd.f32 %v842_v21, %v677_v37  ;;  %v908_v0 = vadd.f32 %v844_v36, %v679_v56  ;;  %v536_v21 = vmul.f32 %v2708_v58, %v2898_v46 }
  0xe6   : > { %v1260_v15 = vpack.c.bf16 %v2133_v39, %v2125_v49  ;;  %v967_v20 = vpop.permute.xlu1 %966  ;;  %1429 = vmatprep.subr.bf16.mxu0 %v1258_v27  ;;  %v537_v22 = vmul.f32 %v2715_v4, %v2898_v46  ;;  %v542_v27 = vmul.f32 %v2717_v5, %v2701_v54  ;;  %v682_v56 = vadd.f32 %v611_v1, %v538_v44 }
  0xe7   : > { %v1065_v33 = vmul.f32 %v2738_v18, %v967_v20  ;;  %v1066_v35 = vmul.f32 %v2740_v19, %v967_v20  ;;  %v1067_v57 = vmul.f32 %v2764_v38, %v967_v20  ;;  %v1068_v55 = vmul.f32 %v2766_v40, %v967_v20  ;;  %1430 = vmatpush1.bf16.msra.mxu0 %v1257_v13 }
  0xe8   : > { %1542 = vmatprep.subr.bf16.mxu1 %v1260_v15  ;;  %v539_v13 = vmul.f32 %v2719_v6, %v2898_v46  ;;  %v750_v39 = vpop.permute.xlu0 %749 }
  0xe9   : > { %v1129_v14 = vadd.f32 %v1065_v33, %v901_v12  ;;  %v1130_v48 = vadd.f32 %v1066_v35, %v902_v28  ;;  %v1131_v43 = vadd.f32 %v1067_v57, %v903_v62  ;;  %1543 = vmatpush1.bf16.msra.mxu1 %v1259_v10  ;;  %v1132_v49 = vadd.f32 %v1068_v55, %v904_v42 }
  0xea   : > { %v971_v50 = vpop.permute.xlu1 %970  ;;  %v543_v10 = vmul.f32 %v2719_v6, %v2701_v54  ;;  %v849_v12 = vmul.f32 %v2712_v63, %v750_v39  ;;  %v850_v15 = vmul.f32 %v2726_v9, %v750_v39  ;;  %v680_v57 = vadd.f32 %v611_v1, %v536_v21 }
  0xeb   : > { %2134 = vtanh.f32 %v1129_v14  ;;  %v1069_v59 = vmul.f32 %v2738_v18, %v971_v50  ;;  %v1070_v51 = vmul.f32 %v2740_v19, %v971_v50  ;;  %v1071_v45 = vmul.f32 %v2764_v38, %v971_v50 }
  0xec   : > { %2136 = vtanh.f32 %v1130_v48  ;;  %v1072_v60 = vmul.f32 %v2766_v40, %v971_v50  ;;  %v681_v55 = vadd.f32 %v611_v1, %v537_v22  ;;  %v851_v36 = vmul.f32 %v2728_v11, %v750_v39 }
  0xed   : > { %2138 = vtanh.f32 %v1131_v43  ;;  %v1133_v24 = vadd.f32 %v1069_v59, %v905_v47  ;;  %v1134_v29 = vadd.f32 %v1070_v51, %v906_v30  ;;  %v1135_v34 = vadd.f32 %v1071_v45, %v907_v31 }
  0xee   : > { %2140 = vtanh.f32 %v1132_v49  ;;  %v1136_v32 = vadd.f32 %v1072_v60, %v908_v0  ;;  %v683_v42 = vadd.f32 %v611_v1, %v539_v13  ;;  %v1281_v1 = vld [vmem:[%s3243_s5] sm:$0xff] }
  0xef   : > { %2142 = vtanh.f32 %v1133_v24  ;;  %v616_v53 = vpop.permute.xlu1 %615  ;;  %1299 = vperm.xlu1 %2076, %v1281_v1  }
  0xf0   : > { %2144 = vtanh.f32 %v1134_v29  ;;  %v684_v14 = vadd.f32 %v616_v53, %v540_v3  ;;  %v685_v30 = vadd.f32 %v616_v53, %v541_v26  ;;  %v686_v31 = vadd.f32 %v616_v53, %v542_v27 }
  0xf1   : > { %2146 = vtanh.f32 %v1135_v34 }
  0xf2   : > { %2148 = vtanh.f32 %v1136_v32  ;;  %v914_v3 = vadd.f32 %v850_v15, %v685_v30  ;;  %v915_v13 = vadd.f32 %v851_v36, %v686_v31 }
  0xf3   : > { %v746_v8 = vpop.permute.xlu1 %745 }
  0xf4   : > { %v845_v46 = vmul.f32 %v2712_v63, %v746_v8  ;;  %v846_v20 = vmul.f32 %v2726_v9, %v746_v8  ;;  %v847_v33 = vmul.f32 %v2728_v11, %v746_v8  ;;  %v848_v48 = vmul.f32 %v2734_v16, %v746_v8 }
  0xf5   : > { %v2135_v61 = vpop.eup %2134  ;;  %v852_v8 = vmul.f32 %v2734_v16, %v750_v39 }
  0xf6   : > { %v2137_v17 = vpop.eup %2136  ;;  %v909_v59 = vadd.f32 %v845_v46, %v680_v57  ;;  %v910_v51 = vadd.f32 %v846_v20, %v681_v55  ;;  %v911_v45 = vadd.f32 %v847_v33, %v682_v56  ;;  %v621_v57 = vpop.permute.xlu0 %620  ;;  %v1284_v55 = vld [vmem:[%s3243_s5 + $0x18] sm:$0xff] }
  0xf7   : > { %v2139_v23 = vpop.eup %2138 }
  0xf8   : > { %v2141_v37 = vpop.eup %2140  ;;  %v2932_v28 = vpop.permute.xlu1 %455 }
  0xf9   : > { %v2143_v62 = vpop.eup %2142  ;;  %v547_v31 = vmul.f32 %v2719_v6, %v2932_v28 }
  0xfa   : > { %v2145_v35 = vpop.eup %2144  ;;  %v1261_v43 = vpack.c.bf16 %v2143_v62, %v2135_v61  ;;  %v687_v61 = vadd.f32 %v616_v53, %v543_v10  ;;  %v758_v30 = vpop.permute.xlu0 %757 }
  0xfb   : > { %v2147_v54 = vpop.eup %2146  ;;  %v1262_v49 = vpack.c.bf16 %v2145_v35, %v2137_v17  ;;  %v912_v17 = vadd.f32 %v848_v48, %v683_v42  ;;  %v1282_v35 = vld [vmem:[%s3243_s5 + $0x8] sm:$0xff]  ;;  %v544_v42 = vmul.f32 %v2708_v58, %v2932_v28  ;;  %v546_v48 = vmul.f32 %v2717_v5, %v2932_v28 }
  0xfc   : > { %v2149_v47 = vpop.eup %2148  ;;  %v1263_v50 = vpack.c.bf16 %v2147_v54, %v2139_v23  ;;  %v913_v23 = vadd.f32 %v849_v12, %v684_v14  ;;  %v916_v39 = vadd.f32 %v852_v8, %v687_v61  ;;  %1304 = vperm.xlu1 %2076, %v1282_v35   ;;  %v545_v14 = vmul.f32 %v2715_v4, %v2932_v28  ;;  %v1283_v28 = vld [vmem:[%s3243_s5 + $0x10] sm:$0xff] }
  0xfd   : > { %v1264_v0 = vpack.c.bf16 %v2149_v47, %v2141_v37  ;;  %v975_v60 = vpop.permute.xlu1 %974  ;;  %1431 = vmatprep.subr.bf16.mxu0 %v1262_v49  ;;  %v548_v47 = vmul.f32 %v2708_v58, %v2722_v7  ;;  %v1285_v49 = vld [vmem:[%s3243_s5 + $0x20] sm:$0xff]  ;;  %1309 = vperm.xlu0 %2077, %v1283_v28   ;;  %v859_v61 = vmul.f32 %v2728_v11, %v758_v30 }
  0xfe   : > { %v1073_v24 = vmul.f32 %v2738_v18, %v975_v60  ;;  %v1074_v29 = vmul.f32 %v2740_v19, %v975_v60  ;;  %v1075_v34 = vmul.f32 %v2764_v38, %v975_v60  ;;  %v1076_v32 = vmul.f32 %v2766_v40, %v975_v60  ;;  %1432 = vmatpush1.bf16.msra.mxu0 %v1261_v43 }
  0xff   : > { %1544 = vmatprep.subr.bf16.mxu1 %v1264_v0  ;;  %v857_v0 = vmul.f32 %v2712_v63, %v758_v30 }
 0x100   : > { %v1137_v21 = vadd.f32 %v1073_v24, %v909_v59  ;;  %v1138_v22 = vadd.f32 %v1074_v29, %v910_v51  ;;  %v1139_v44 = vadd.f32 %v1075_v34, %v911_v45  ;;  %1545 = vmatpush1.bf16.msra.mxu1 %v1263_v50  ;;  %v1140_v37 = vadd.f32 %v1076_v32, %v912_v17 }
 0x101   : > { %v979_v26 = vpop.permute.xlu1 %978  ;;  %1314 = vperm.xlu1 %2076, %v1284_v55   ;;  %v549_v59 = vmul.f32 %v2715_v4, %v2722_v7  ;;  %v550_v51 = vmul.f32 %v2717_v5, %v2722_v7  ;;  %v551_v45 = vmul.f32 %v2719_v6, %v2722_v7  ;;  %v858_v29 = vmul.f32 %v2726_v9, %v758_v30  ;;  %v1287_v7 = vld [vmem:[%s3243_s5 + $0x30] sm:$0xff] }
 0x102   : > { %2150 = vtanh.f32 %v1137_v21  ;;  %v1077_v27 = vmul.f32 %v2738_v18, %v979_v26  ;;  %v1078_v62 = vmul.f32 %v2740_v19, %v979_v26  ;;  %v1079_v53 = vmul.f32 %v2764_v38, %v979_v26 }
 0x103   : > { %2152 = vtanh.f32 %v1138_v22  ;;  %v1080_v10 = vmul.f32 %v2766_v40, %v979_v26  ;;  %v688_v17 = vadd.f32 %v621_v57, %v544_v42  ;;  %v689_v21 = vadd.f32 %v621_v57, %v545_v14  ;;  %v1288_v42 = vld [vmem:[%s3243_s5 + $0x38] sm:$0xff] }
 0x104   : > { %2154 = vtanh.f32 %v1139_v44  ;;  %v1141_v46 = vadd.f32 %v1077_v27, %v913_v23  ;;  %v1142_v20 = vadd.f32 %v1078_v62, %v914_v3  ;;  %v1143_v12 = vadd.f32 %v1079_v53, %v915_v13  ;;  %v1286_v44 = vld [vmem:[%s3243_s5 + $0x28] sm:$0xff] }
 0x105   : > { %2156 = vtanh.f32 %v1140_v37  ;;  %v1144_v15 = vadd.f32 %v1080_v10, %v916_v39  ;;  %1319 = vperm.xlu1 %2076, %v1285_v49   ;;  %v690_v22 = vadd.f32 %v621_v57, %v546_v48  ;;  %v691_v3 = vadd.f32 %v621_v57, %v547_v31  ;;  %1324 = vperm.xlu0 %2077, %v1286_v44   ;;  %v1292_v44 = vld [vmem:[%s3243_s5 + $0x58] sm:$0xff] }
 0x106   : > { %2158 = vtanh.f32 %v1141_v46  ;;  %v2952_v33 = vpop.permute.xlu1 %625  ;;  %v860_v14 = vmul.f32 %v2734_v16, %v758_v30 }
 0x107   : > { %2160 = vtanh.f32 %v1142_v20  ;;  %v692_v13 = vadd.f32 %v2952_v33, %v548_v47  ;;  %v693_v62 = vadd.f32 %v2952_v33, %v549_v59  ;;  %v694_v53 = vadd.f32 %v2952_v33, %v550_v51 }
 0x108   : > { %2162 = vtanh.f32 %v1143_v12  ;;  %v695_v48 = vadd.f32 %v2952_v33, %v551_v45 }
 0x109   : > { %2164 = vtanh.f32 %v1144_v15  ;;  %1329 = vperm.xlu1 %2076, %v1287_v7   ;;  %v921_v47 = vadd.f32 %v857_v0, %v692_v13  ;;  %v922_v59 = vadd.f32 %v858_v29, %v693_v62  ;;  %v923_v51 = vadd.f32 %v859_v61, %v694_v53  ;;  %1334 = vperm.xlu0 %2077, %v1288_v42   ;;  %v1291_v0 = vld [vmem:[%s3243_s5 + $0x50] sm:$0xff]  ;;  %v1290_v29 = vld [vmem:[%s3243_s5 + $0x48] sm:$0xff] }
 0x10a   : > { %v754_v56 = vpop.permute.xlu1 %753  ;;  %v1295_v13 = vld [vmem:[%s3243_s5 + $0x70] sm:$0xff]  ;;  %v557_v53 = vmul.f32 %v2715_v4, %v2753_v25  ;;  %v3075_v42 = vmul.f32 %v2719_v6, %v2777_v52 }
 0x10b   : > { %v853_v34 = vmul.f32 %v2712_v63, %v754_v56  ;;  %v854_v32 = vmul.f32 %v2726_v9, %v754_v56  ;;  %v855_v1 = vmul.f32 %v2728_v11, %v754_v56  ;;  %v856_v37 = vmul.f32 %v2734_v16, %v754_v56 }
 0x10c   : > { %v2151_v36 = vpop.eup %2150 }
 0x10d   : > { %v2153_v54 = vpop.eup %2152  ;;  %v917_v46 = vadd.f32 %v853_v34, %v688_v17  ;;  %v918_v20 = vadd.f32 %v854_v32, %v689_v21  ;;  %v919_v12 = vadd.f32 %v855_v1, %v690_v22  ;;  %v3012_v34 = vpop.permute.xlu0 %630  ;;  %v924_v32 = vadd.f32 %v860_v14, %v695_v48  ;;  %1344 = vperm.xlu0 %2077, %v1290_v29   ;;  %v1293_v22 = vld [vmem:[%s3243_s5 + $0x60] sm:$0xff]  ;;  %v1296_v48 = vld [vmem:[%s3243_s5 + $0x78] sm:$0xff] }
 0x10e   : > { %v2155_v43 = vpop.eup %2154 }
 0x10f   : > { %v2157_v50 = vpop.eup %2156  ;;  %v2980_v60 = vpop.permute.xlu1 %465 }
 0x110   : > { %v2159_v24 = vpop.eup %2158 }
 0x111   : > { %v2161_v8 = vpop.eup %2160  ;;  %v1265_v26 = vpack.c.bf16 %v2159_v24, %v2151_v36  ;;  %1354 = vperm.xlu0 %2077, %v1292_v44  }
 0x112   : > { %v2163_v23 = vpop.eup %2162  ;;  %v1266_v39 = vpack.c.bf16 %v2161_v8, %v2153_v54  ;;  %v1289_v54 = vld [vmem:[%s3243_s5 + $0x40] sm:$0xff] }
 0x113   : > { %v2165_v27 = vpop.eup %2164  ;;  %v1267_v10 = vpack.c.bf16 %v2163_v23, %v2155_v43  ;;  %v920_v43 = vadd.f32 %v856_v37, %v691_v3  ;;  %1339 = vperm.xlu1 %2076, %v1289_v54   ;;  %v3032_v23 = vpop.permute.xlu0 %765  ;;  %v1294_v37 = vld [vmem:[%s3243_s5 + $0x68] sm:$0xff]  ;;  %v3067_v54 = vmul.f32 %v2715_v4, %v2777_v52 }
 0x114   : > { %v1268_v15 = vpack.c.bf16 %v2165_v27, %v2157_v50  ;;  %v983_v35 = vpop.permute.xlu1 %982  ;;  %1433 = vmatprep.subr.bf16.mxu0 %v1266_v39  ;;  %v556_v27 = vmul.f32 %v2708_v58, %v2753_v25  ;;  %v552_v39 = vmul.f32 %v2708_v58, %v2980_v60 }
 0x115   : > { %v1081_v57 = vmul.f32 %v2738_v18, %v983_v35  ;;  %v1082_v55 = vmul.f32 %v2740_v19, %v983_v35  ;;  %v1083_v56 = vmul.f32 %v2764_v38, %v983_v35  ;;  %v1084_v36 = vmul.f32 %v2766_v40, %v983_v35  ;;  %1434 = vmatpush1.bf16.msra.mxu0 %v1265_v26 }
 0x116   : > { %1546 = vmatprep.subr.bf16.mxu1 %v1268_v15  ;;  %v559_v15 = vmul.f32 %v2719_v6, %v2753_v25  ;;  %v3056_v35 = vmul.f32 %v2708_v58, %v2777_v52  ;;  %1364 = vperm.xlu0 %2077, %v1294_v37  }
 0x117   : > { %v1145_v31 = vadd.f32 %v1081_v57, %v917_v46  ;;  %v1146_v49 = vadd.f32 %v1082_v55, %v918_v20  ;;  %v1147_v50 = vadd.f32 %v1083_v56, %v919_v12  ;;  %1547 = vmatpush1.bf16.msra.mxu1 %v1267_v10  ;;  %v1148_v28 = vadd.f32 %v1084_v36, %v920_v43  ;;  %v3058_v57 = vpop.permute.xlu0 %640  ;;  %v1748_v56 = vld [vmem:[%s3245_s7] sm:$0x3] }
 0x118   : > { %v987_v24 = vpop.permute.xlu1 %986  ;;  %1349 = vperm.xlu1 %2076, %v1291_v0   ;;  %v553_v10 = vmul.f32 %v2715_v4, %v2980_v60  ;;  %v554_v46 = vmul.f32 %v2717_v5, %v2980_v60  ;;  %v558_v12 = vmul.f32 %v2717_v5, %v2753_v25  ;;  %v555_v55 = vmul.f32 %v2719_v6, %v2980_v60 }
 0x119   : > { %2166 = vtanh.f32 %v1145_v31  ;;  %v1085_v30 = vmul.f32 %v2738_v18, %v987_v24  ;;  %v1086_v33 = vmul.f32 %v2740_v19, %v987_v24  ;;  %v1087_v45 = vmul.f32 %v2764_v38, %v987_v24 }
 0x11a   : > { %2168 = vtanh.f32 %v1146_v49  ;;  %v1088_v1 = vmul.f32 %v2766_v40, %v987_v24  ;;  %v3071_v25 = vmul.f32 %v2717_v5, %v2777_v52  ;;  %v865_v60 = vmul.f32 %v2712_v63, %v3032_v23  ;;  %1374 = vperm.xlu0 %2077, %v1296_v48  }
 0x11b   : > { %2170 = vtanh.f32 %v1147_v50  ;;  %v1149_v7 = vadd.f32 %v1085_v30, %v921_v47  ;;  %v1150_v8 = vadd.f32 %v1086_v33, %v922_v59  ;;  %v1151_v61 = vadd.f32 %v1087_v45, %v923_v51 }
 0x11c   : > { %2172 = vtanh.f32 %v1148_v28  ;;  %v1152_v17 = vadd.f32 %v1088_v1, %v924_v32  ;;  %1359 = vperm.xlu1 %2076, %v1293_v22   ;;  %v866_v47 = vmul.f32 %v2726_v9, %v3032_v23  ;;  %v867_v59 = vmul.f32 %v2728_v11, %v3032_v23 }
 0x11d   : > { %2174 = vtanh.f32 %v1149_v7  ;;  %v3024_v21 = vpop.permute.xlu1 %635  ;;  %v696_v51 = vadd.f32 %v3012_v34, %v552_v39  ;;  %v697_v28 = vadd.f32 %v3012_v34, %v553_v10  ;;  %v698_v24 = vadd.f32 %v3012_v34, %v554_v46 }
 0x11e   : > { %2176 = vtanh.f32 %v1150_v8  ;;  %v699_v33 = vadd.f32 %v3012_v34, %v555_v55  ;;  %v700_v45 = vadd.f32 %v3024_v21, %v556_v27  ;;  %v701_v1 = vadd.f32 %v3024_v21, %v557_v53 }
 0x11f   : > { %2178 = vtanh.f32 %v1151_v61  ;;  %v702_v7 = vadd.f32 %v3024_v21, %v558_v12  ;;  %v868_v53 = vmul.f32 %v2734_v16, %v3032_v23 }
 0x120   : > { %2180 = vtanh.f32 %v1152_v17  ;;  %1369 = vperm.xlu1 %2076, %v1295_v13   ;;  %v774_v17 = vpop.permute.xlu0 %773 }
 0x121   : > { %v762_v3 = vpop.permute.xlu1 %761  ;;  %v873_v46 = vmul.f32 %v2712_v63, %v774_v17  ;;  %v931_v48 = vadd.f32 %v867_v59, %v702_v7 }
 0x122   : > { %v861_v31 = vmul.f32 %v2712_v63, %v762_v3  ;;  %v862_v49 = vmul.f32 %v2726_v9, %v762_v3  ;;  %v863_v52 = vmul.f32 %v2728_v11, %v762_v3  ;;  %v864_v0 = vmul.f32 %v2734_v16, %v762_v3 }
 0x123   : > { %v2167_v26 = vpop.eup %2166 }
 0x124   : > { %v2169_v62 = vpop.eup %2168  ;;  %1751 = vperm.xlu1 %2076, %v1748_v56   ;;  %v925_v22 = vadd.f32 %v861_v31, %v696_v51  ;;  %v926_v44 = vadd.f32 %v862_v49, %v697_v28  ;;  %v927_v13 = vadd.f32 %v863_v52, %v698_v24  ;;  %v928_v10 = vadd.f32 %v864_v0, %v699_v33  ;;  %v1003_v51 = vpop.permute.xlu0 %1002 }
 0x125   : > { %v2171_v20 = vpop.eup %2170  ;;  %v929_v56 = vadd.f32 %v865_v60, %v700_v45  ;;  %v875_v28 = vmul.f32 %v2728_v11, %v774_v17  ;;  %v876_v24 = vmul.f32 %v2734_v16, %v774_v17  ;;  %v1101_v45 = vmul.f32 %v2738_v18, %v1003_v51 }
 0x126   : > { %v2173_v36 = vpop.eup %2172  ;;  %v3079_v14 = vpop.permute.xlu1 %475  ;;  %v1102_v0 = vmul.f32 %v2740_v19, %v1003_v51 }
 0x127   : > { %v2175_v43 = vpop.eup %2174 }
 0x128   : > { %v2177_v50 = vpop.eup %2176  ;;  %v1269_v29 = vpack.c.bf16 %v2175_v43, %v2167_v26 }
 0x129   : > { %v2179_v30 = vpop.eup %2178  ;;  %v1270_v8 = vpack.c.bf16 %v2177_v50, %v2169_v62  ;;  %v703_v62 = vadd.f32 %v3024_v21, %v559_v15  ;;  %v874_v15 = vmul.f32 %v2726_v9, %v774_v17 }
 0x12a   : > { %v2181_v32 = vpop.eup %2180  ;;  %v1271_v61 = vpack.c.bf16 %v2179_v30, %v2171_v20 }
 0x12b   : > { %v1272_v37 = vpack.c.bf16 %v2181_v32, %v2173_v36  ;;  %v991_v39 = vpop.permute.xlu1 %990  ;;  %1435 = vmatprep.subr.bf16.mxu0 %v1270_v8  ;;  %v930_v36 = vadd.f32 %v866_v47, %v701_v1  ;;  %v932_v52 = vadd.f32 %v868_v53, %v703_v62  ;;  %v560_v8 = vmul.f32 %v2708_v58, %v3079_v14 }
 0x12c   : > { %v1089_v34 = vmul.f32 %v2738_v18, %v991_v39  ;;  %v1090_v3 = vmul.f32 %v2740_v19, %v991_v39  ;;  %v1091_v26 = vmul.f32 %v2764_v38, %v991_v39  ;;  %v1092_v27 = vmul.f32 %v2766_v40, %v991_v39  ;;  %1436 = vmatpush1.bf16.msra.mxu0 %v1269_v29 }
 0x12d   : > { %1548 = vmatprep.subr.bf16.mxu1 %v1272_v37  ;;  %v1103_v29 = vmul.f32 %v2764_v38, %v1003_v51  ;;  %v704_v53 = vadd.f32 %v3058_v57, %v560_v8  ;;  %v2080_v8 = vld [vmem:[%s3242_s4 + $0x10] sm:$0xff]  }
 0x12e   : > { %v1153_v20 = vadd.f32 %v1089_v34, %v925_v22  ;;  %v1154_v12 = vadd.f32 %v1090_v3, %v926_v44  ;;  %v1155_v55 = vadd.f32 %v1091_v26, %v927_v13  ;;  %1549 = vmatpush1.bf16.msra.mxu1 %v1271_v61  ;;  %v1156_v43 = vadd.f32 %v1092_v27, %v928_v10 }
 0x12f   : > { %v995_v31 = vpop.permute.xlu1 %994  ;;  %v561_v61 = vmul.f32 %v2715_v4, %v3079_v14 }
 0x130   : > { %2182 = vtanh.f32 %v1153_v20  ;;  %v1093_v49 = vmul.f32 %v2738_v18, %v995_v31  ;;  %v1094_v23 = vmul.f32 %v2740_v19, %v995_v31  ;;  %v1095_v21 = vmul.f32 %v2764_v38, %v995_v31 }
 0x131   : > { %2184 = vtanh.f32 %v1154_v12  ;;  %v1096_v50 = vmul.f32 %v2766_v40, %v995_v31 }
 0x132   : > { %2186 = vtanh.f32 %v1155_v55  ;;  %v1157_v60 = vadd.f32 %v1093_v49, %v929_v56  ;;  %v1158_v47 = vadd.f32 %v1094_v23, %v930_v36  ;;  %v1159_v59 = vadd.f32 %v1095_v21, %v931_v48 }
 0x133   : > { %2188 = vtanh.f32 %v1156_v43  ;;  %v1160_v30 = vadd.f32 %v1096_v50, %v932_v52 }
 0x134   : > { %2190 = vtanh.f32 %v1157_v60  ;;  %v646_v33 = vpop.permute.xlu1 %645 }
 0x135   : > { %2192 = vtanh.f32 %v1158_v47  ;;  %v708_v32 = vadd.f32 %v646_v33, %v3056_v35  ;;  %v709_v1 = vadd.f32 %v646_v33, %v3067_v54  ;;  %v710_v7 = vadd.f32 %v646_v33, %v3071_v25 }
 0x136   : > { %2194 = vtanh.f32 %v1159_v59  ;;  %v711_v17 = vadd.f32 %v646_v33, %v3075_v42  ;;  %v562_v35 = vmul.f32 %v2717_v5, %v3079_v14  ;;  %v563_v54 = vmul.f32 %v2719_v6, %v3079_v14 }
 0x137   : > { %2196 = vtanh.f32 %v1160_v30  ;;  %v937_v22 = vadd.f32 %v873_v46, %v708_v32  ;;  %v938_v44 = vadd.f32 %v874_v15, %v709_v1  ;;  %v939_v13 = vadd.f32 %v875_v28, %v710_v7  ;;  %v2078_v1 = vld [vmem:[%s3242_s4] sm:$0xff]   ;;  %v2079_v7 = vld [vmem:[%s3242_s4 + $0x8] sm:$0xff]  }
 0x138   : > { %v1104_v25 = vmul.f32 %v2766_v40, %v1003_v51  ;;  %v770_v37 = vpop.permute.xlu1 %769  ;;  %v940_v58 = vadd.f32 %v876_v24, %v711_v17  ;;  %v705_v5 = vadd.f32 %v3058_v57, %v561_v61  ;;  %v706_v10 = vadd.f32 %v3058_v57, %v562_v35  ;;  %v2081_v61 = vld [vmem:[%s3242_s4 + $0x18] sm:$0xff]   ;;  %v2082_v17 = vld [vmem:[%s3242_s4 + $0x20] sm:$0xff]  }
 0x139   : > { %v1165_v39 = vadd.f32 %v1101_v45, %v937_v22  ;;  %v1166_v34 = vadd.f32 %v1102_v0, %v938_v44  ;;  %v869_v4 = vmul.f32 %v2712_v63, %v770_v37  ;;  %v870_v42 = vmul.f32 %v2726_v9, %v770_v37  ;;  %v2083_v22 = vld [vmem:[%s3242_s4 + $0x28] sm:$0xff]   ;;  %v2084_v44 = vld [vmem:[%s3242_s4 + $0x30] sm:$0xff]  }
 0x13a   : > { %v2183_v3 = vpop.eup %2182  ;;  %v871_v26 = vmul.f32 %v2728_v11, %v770_v37  ;;  %v1167_v62 = vadd.f32 %v1103_v29, %v939_v13  ;;  %v872_v6 = vmul.f32 %v2734_v16, %v770_v37  ;;  %v707_v46 = vadd.f32 %v3058_v57, %v563_v54  ;;  %v2085_v13 = vld [vmem:[%s3242_s4 + $0x38] sm:$0xff]  }
 0x13b   : > { %v2185_v27 = vpop.eup %2184  ;;  %2198 = vtanh.f32 %v1165_v39  ;;  %v1168_v20 = vadd.f32 %v1104_v25, %v940_v58  ;;  %v933_v9 = vadd.f32 %v869_v4, %v704_v53  ;;  %v934_v12 = vadd.f32 %v870_v42, %v705_v5 }
 0x13c   : > { %v2187_v14 = vpop.eup %2186  ;;  %2200 = vtanh.f32 %v1166_v34  ;;  %v935_v56 = vadd.f32 %v871_v26, %v706_v10  ;;  %v936_v31 = vadd.f32 %v872_v6, %v707_v46 }
 0x13d   : > { %v2189_v63 = vpop.eup %2188  ;;  %v999_v11 = vpop.permute.xlu1 %998  ;;  %2202 = vtanh.f32 %v1167_v62 }
 0x13e   : > { %v2191_v55 = vpop.eup %2190  ;;  %v1097_v36 = vmul.f32 %v2738_v18, %v999_v11  ;;  %v1098_v48 = vmul.f32 %v2740_v19, %v999_v11  ;;  %v1099_v16 = vmul.f32 %v2764_v38, %v999_v11  ;;  %v1100_v57 = vmul.f32 %v2766_v40, %v999_v11 }
 0x13f   : > { %v2193_v43 = vpop.eup %2192  ;;  %v1273_v49 = vpack.c.bf16 %v2191_v55, %v2183_v3  ;;  %2204 = vtanh.f32 %v1168_v20 }
 0x140   : > { %v2195_v23 = vpop.eup %2194  ;;  %v1161_v21 = vadd.f32 %v1097_v36, %v933_v9  ;;  %v1162_v15 = vadd.f32 %v1098_v48, %v934_v12  ;;  %v1163_v52 = vadd.f32 %v1099_v16, %v935_v56  ;;  %v1274_v50 = vpack.c.bf16 %v2193_v43, %v2185_v27 }
 0x141   : > { %v2197_v51 = vpop.eup %2196  ;;  %v1164_v60 = vadd.f32 %v1100_v57, %v936_v31  ;;  %v1275_v47 = vpack.c.bf16 %v2195_v23, %v2187_v14 }
 0x142   : > { %2206 = vtanh.f32 %v1161_v21  ;;  %1437 = vmatprep.subr.bf16.mxu0 %v1274_v50  ;;  %v1276_v18 = vpack.c.bf16 %v2197_v51, %v2189_v63 }
 0x143   : > { %2208 = vtanh.f32 %v1162_v15  ;;  %1438 = vmatpush1.bf16.msra.mxu0 %v1273_v49 }
 0x144   : > { %2210 = vtanh.f32 %v1163_v52  ;;  %1550 = vmatprep.subr.bf16.mxu1 %v1276_v18 }
 0x145   : > { %2212 = vtanh.f32 %v1164_v60  ;;  %1551 = vmatpush1.bf16.msra.mxu1 %v1275_v47  ;;  %v2199_v19 = vpop.eup %2198 }
 0x146   : > { %v2201_v38 = vpop.eup %2200 }
 0x147   : > { %v2203_v40 = vpop.eup %2202 }
 0x149   : > { %v2205_v59 = vpop.eup %2204 }
 0x14c   : > { %v2207_v28 = vpop.eup %2206 }
 0x14d   : > { %v2209_v24 = vpop.eup %2208  ;;  %v1277_v30 = vpack.c.bf16 %v2199_v19, %v2207_v28 }
 0x14e   : > { %v2211_v33 = vpop.eup %2210  ;;  %v1278_v45 = vpack.c.bf16 %v2201_v38, %v2209_v24 }
 0x14f   : > { %v2213_v0 = vpop.eup %2212  ;;  %v1279_v29 = vpack.c.bf16 %v2203_v40, %v2211_v33 }
 0x150   : > { %1439 = vmatprep.subr.bf16.mxu0 %v1278_v45  ;;  %v1280_v32 = vpack.c.bf16 %v2205_v59, %v2213_v0 }
 0x151   : > { %1440 = vmatpush1.bf16.msra.mxu0 %v1277_v30 }
 0x152   : > { %1552 = vmatprep.subr.bf16.mxu1 %v1280_v32 }
 0x153   : > { %1553 = vmatpush1.bf16.msra.mxu1 %v1279_v29 }
 0x154   : > { %1458 = vmatmul.mubr.bf16.vlgmr.msra.gmra.mrb[0].mxu0 %v2078_v1 }
 0x155   : > { %1467 = vmatprep.mubr.bf16.mxu0 %v2422_v2 }
 0x156   : > { %1571 = vmatmul.mubr.bf16.vlgmr.msra.gmra.mrb[0].mxu1 %v2078_v1 }
 0x157   : > { %1580 = vmatprep.mubr.bf16.mxu1 %v2422_v2 }
 0x15c   : > { %1468 = vmatmul.mubr.bf16.gmra.mrb[4].mxu0 %v2079_v7 }
 0x15d   : > { %1477 = vmatprep.mubr.bf16.mxu0 %v2422_v2 }
 0x15e   : > { %1581 = vmatmul.mubr.bf16.gmra.mrb[4].mxu1 %v2079_v7 }
 0x15f   : > { %1590 = vmatprep.mubr.bf16.mxu1 %v2422_v2 }
 0x164   : > { %1478 = vmatmul.mubr.bf16.gmra.mrb[8].mxu0 %v2080_v8 }
 0x165   : > { %1487 = vmatprep.mubr.bf16.mxu0 %v2422_v2 }
 0x166   : > { %1591 = vmatmul.mubr.bf16.gmra.mrb[8].mxu1 %v2080_v8 }
 0x167   : > { %1600 = vmatprep.mubr.bf16.mxu1 %v2422_v2 }
 0x16c   : > { %1488 = vmatmul.mubr.bf16.gmra.mrb[12].mxu0 %v2081_v61 }
 0x16d   : > { %1497 = vmatprep.mubr.bf16.mxu0 %v2422_v2 }
 0x16e   : > { %1601 = vmatmul.mubr.bf16.gmra.mrb[12].mxu1 %v2081_v61  ;;  %v1300_v35 = vpop.permute.xlu1 %1299 }
 0x16f   : > { %1610 = vmatprep.mubr.bf16.mxu1 %v2422_v2 }
 0x174   : > { %1498 = vmatmul.mubr.bf16.gmra.mrb[16].mxu0 %v2082_v17 }
 0x175   : > { %1507 = vmatprep.mubr.bf16.mxu0 %v2422_v2 }
 0x176   : > { %1611 = vmatmul.mubr.bf16.gmra.mrb[16].mxu1 %v2082_v17 }
 0x177   : > { %1620 = vmatprep.mubr.bf16.mxu1 %v2422_v2 }
 0x17b   : > { %v1305_v25 = vpop.permute.xlu1 %1304 }
 0x17c   : > { %1508 = vmatmul.mubr.bf16.gmra.mrb[20].mxu0 %v2083_v22  ;;  %v1310_v14 = vpop.permute.xlu0 %1309 }
 0x17d   : > { %1517 = vmatprep.mubr.bf16.mxu0 %v2422_v2 }
 0x17e   : > { %1621 = vmatmul.mubr.bf16.gmra.mrb[20].mxu1 %v2083_v22 }
 0x17f   : > { %1630 = vmatprep.mubr.bf16.mxu1 %v2422_v2 }
 0x180   : > { %v1315_v63 = vpop.permute.xlu1 %1314 }
 0x184   : > { %1518 = vmatmul.mubr.bf16.gmra.mrb[24].mxu0 %v2084_v44  ;;  %v1320_v60 = vpop.permute.xlu1 %1319  ;;  %v1325_v19 = vpop.permute.xlu0 %1324 }
 0x185   : > { %1527 = vmatprep.mubr.bf16.mxu0 %v2422_v2 }
 0x186   : > { %1631 = vmatmul.mubr.bf16.gmra.mrb[24].mxu1 %v2084_v44 }
 0x187   : > { %1640 = vmatprep.mubr.bf16.mxu1 %v2422_v2 }
 0x18c   : > { %1528 = vmatmul.mubr.bf16.gmra.mrb[28].mxu0 %v2085_v13 }
 0x18d   : > { %1786 = vmatprep.mubr.bf16.mxu0 %v2422_v2 }
 0x18e   : > { %1641 = vmatmul.mubr.bf16.gmra.mrb[28].mxu1 %v2085_v13 }
 0x18f   : > { %1827 = vmatprep.mubr.bf16.mxu1 %v2422_v2 }
 0x227   : > { %v1459_v54 = vpop.f32.mrb[0].mxu0 }
 0x228   : > { %v1460_v37 = vadd.f32 %v1459_v54, %v1300_v35  ;;  %v1461_v58 = vpop.f32.mrb[1].mxu0 }
 0x229   : > { %v1572_v39 = vpop.f32.mrb[0].mxu1  ;;  %v1462_v34 = vadd.f32 %v1461_v58, %v1300_v35  ;;  %v1463_v4 = vpop.f32.mrb[2].mxu0 }
 0x22a   : > { %2214 = vtanh.f32 %v1460_v37  ;;  %v1573_v3 = vadd.f32 %v1572_v39, %v1300_v35  ;;  %v1574_v42 = vpop.f32.mrb[1].mxu1  ;;  %v1464_v26 = vadd.f32 %v1463_v4, %v1305_v25  ;;  %v1465_v27 = vpop.f32.mrb[3].mxu0 }
 0x22b   : > { %2216 = vtanh.f32 %v1462_v34  ;;  %v1575_v53 = vadd.f32 %v1574_v42, %v1300_v35  ;;  %v1576_v5 = vpop.f32.mrb[2].mxu1  ;;  %v1466_v6 = vadd.f32 %v1465_v27, %v1305_v25  ;;  %v1330_v4 = vpop.permute.xlu1 %1329 }
 0x22c   : > { %2218 = vtanh.f32 %v1573_v3  ;;  %v1577_v62 = vadd.f32 %v1576_v5, %v1305_v25  ;;  %v1578_v2 = vpop.f32.mrb[3].mxu1 }
 0x22d   : > { %2220 = vtanh.f32 %v1575_v53  ;;  %v1579_v10 = vadd.f32 %v1578_v2, %v1305_v25 }
 0x22e   : > { %2222 = vtanh.f32 %v1464_v26  ;;  %v1335_v26 = vpop.permute.xlu0 %1334 }
 0x22f   : > { %2224 = vtanh.f32 %v1577_v62  ;;  %v1469_v46 = vpop.f32.mrb[4].mxu0 }
 0x230   : > { %2226 = vtanh.f32 %v1466_v6  ;;  %v1470_v20 = vadd.f32 %v1469_v46, %v1310_v14  ;;  %v1471_v9 = vpop.f32.mrb[5].mxu0 }
 0x231   : > { %2228 = vtanh.f32 %v1579_v10  ;;  %v1582_v12 = vpop.f32.mrb[4].mxu1  ;;  %v1472_v11 = vadd.f32 %v1471_v9, %v1310_v14  ;;  %v1473_v55 = vpop.f32.mrb[6].mxu0 }
 0x232   : > { %2230 = vtanh.f32 %v1470_v20  ;;  %v1583_v56 = vadd.f32 %v1582_v12, %v1310_v14  ;;  %v1584_v36 = vpop.f32.mrb[5].mxu1  ;;  %v1474_v48 = vadd.f32 %v1473_v55, %v1315_v63  ;;  %v1475_v16 = vpop.f32.mrb[7].mxu0 }
 0x233   : > { %2232 = vtanh.f32 %v1472_v11  ;;  %v1585_v43 = vadd.f32 %v1584_v36, %v1310_v14  ;;  %v1586_v31 = vpop.f32.mrb[6].mxu1  ;;  %v1476_v23 = vadd.f32 %v1475_v16, %v1315_v63 }
 0x234   : > { %v2215_v57 = vpop.eup %2214  ;;  %2234 = vtanh.f32 %v1583_v56  ;;  %v1587_v49 = vadd.f32 %v1586_v31, %v1315_v63  ;;  %v1588_v21 = vpop.f32.mrb[7].mxu1 }
 0x235   : > { %v2217_v15 = vpop.eup %2216  ;;  %2236 = vtanh.f32 %v1585_v43  ;;  %v1589_v52 = vadd.f32 %v1588_v21, %v1315_v63 }
 0x236   : > { %v2219_v50 = vpop.eup %2218  ;;  %2238 = vtanh.f32 %v1474_v48 }
 0x237   : > { %v2221_v51 = vpop.eup %2220  ;;  %2240 = vtanh.f32 %v1587_v49  ;;  %v1479_v47 = vpop.f32.mrb[8].mxu0 }
 0x238   : > { %v2223_v18 = vpop.eup %2222  ;;  %2242 = vtanh.f32 %v1476_v23  ;;  %v1480_v38 = vadd.f32 %v1479_v47, %v1320_v60  ;;  %v1481_v40 = vpop.f32.mrb[9].mxu0 }
 0x239   : > { %v2225_v59 = vpop.eup %2224  ;;  %2244 = vtanh.f32 %v1589_v52  ;;  %v1592_v28 = vpop.f32.mrb[8].mxu1  ;;  %v1482_v24 = vadd.f32 %v1481_v40, %v1320_v60  ;;  %v1716_v33 = vpack.c.bf16 %v2223_v18, %v2215_v57 }
 0x23a   : > { %v1483_v30 = vpop.f32.mrb[10].mxu0  ;;  %v2227_v45 = vpop.eup %2226  ;;  %2246 = vtanh.f32 %v1480_v38  ;;  %v1593_v0 = vadd.f32 %v1592_v28, %v1320_v60  ;;  %v1718_v7 = vpack.c.bf16 %v2225_v59, %v2219_v50 }
 0x23b   : > { %v1594_v29 = vpop.f32.mrb[9].mxu1  ;;  %v1484_v32 = vadd.f32 %v1483_v30, %v1325_v19  ;;  %v1485_v1 = vpop.f32.mrb[11].mxu0  ;;  %2248 = vtanh.f32 %v1482_v24  ;;  %v1717_v22 = vpack.c.bf16 %v2227_v45, %v2217_v15 }
 0x23c   : > { %v2229_v8 = vpop.eup %2228  ;;  %v1595_v61 = vadd.f32 %v1594_v29, %v1320_v60  ;;  %v1596_v17 = vpop.f32.mrb[10].mxu1  ;;  %2250 = vtanh.f32 %v1593_v0  ;;  %v1486_v35 = vadd.f32 %v1485_v1, %v1325_v19 }
 0x23d   : > { %v2231_v44 = vpop.eup %2230  ;;  %v1597_v13 = vadd.f32 %v1596_v17, %v1325_v19  ;;  %v1598_v54 = vpop.f32.mrb[11].mxu1  ;;  %v1719_v25 = vpack.c.bf16 %v2229_v8, %v2221_v51  ;;  %1754 = vmatprep.subr.bf16.mxu0 %v1717_v22 }
 0x23e   : > { %v2233_v37 = vpop.eup %2232  ;;  %2252 = vtanh.f32 %v1595_v61  ;;  %v1599_v58 = vadd.f32 %v1598_v54, %v1325_v19  ;;  %1755 = vmatpush1.bf16.msra.mxu0 %v1716_v33  ;;  %v1340_v52 = vpop.permute.xlu1 %1339 }
 0x23f   : > { %v2235_v39 = vpop.eup %2234  ;;  %2254 = vtanh.f32 %v1484_v32  ;;  %1795 = vmatprep.subr.bf16.mxu1 %v1719_v25  ;;  %v1489_v3 = vpop.f32.mrb[12].mxu0 }
 0x240   : > { %v2237_v34 = vpop.eup %2236  ;;  %2256 = vtanh.f32 %v1597_v13  ;;  %1796 = vmatpush1.bf16.msra.mxu1 %v1718_v7  ;;  %v1490_v27 = vadd.f32 %v1489_v3, %v1330_v4  ;;  %v1491_v53 = vpop.f32.mrb[13].mxu0 }
 0x241   : > { %v2239_v42 = vpop.eup %2238  ;;  %2258 = vtanh.f32 %v1486_v35  ;;  %v1602_v62 = vpop.f32.mrb[12].mxu1  ;;  %v1492_v6 = vadd.f32 %v1491_v53, %v1330_v4 }
 0x242   : > { %v2241_v5 = vpop.eup %2240  ;;  %2260 = vtanh.f32 %v1599_v58  ;;  %v1493_v2 = vpop.f32.mrb[14].mxu0  ;;  %v1720_v14 = vpack.c.bf16 %v2239_v42, %v2231_v44  ;;  %v1603_v46 = vadd.f32 %v1602_v62, %v1330_v4 }
 0x243   : > { %v2243_v10 = vpop.eup %2242  ;;  %2262 = vtanh.f32 %v1490_v27  ;;  %v1604_v63 = vpop.f32.mrb[13].mxu1  ;;  %v1494_v20 = vadd.f32 %v1493_v2, %v1335_v26  ;;  %v1722_v12 = vpack.c.bf16 %v2241_v5, %v2235_v39 }
 0x244   : > { %v1495_v9 = vpop.f32.mrb[15].mxu0  ;;  %v2245_v11 = vpop.eup %2244  ;;  %2264 = vtanh.f32 %v1492_v6  ;;  %v1605_v55 = vadd.f32 %v1604_v63, %v1330_v4  ;;  %v1721_v36 = vpack.c.bf16 %v2243_v10, %v2233_v37 }
 0x245   : > { %v1606_v56 = vpop.f32.mrb[14].mxu1  ;;  %v2247_v48 = vpop.eup %2246  ;;  %2266 = vtanh.f32 %v1603_v46  ;;  %v1496_v43 = vadd.f32 %v1495_v9, %v1335_v26  ;;  %v1723_v57 = vpack.c.bf16 %v2245_v11, %v2237_v34 }
 0x246   : > { %v1607_v16 = vadd.f32 %v1606_v56, %v1335_v26  ;;  %v1608_v31 = vpop.f32.mrb[15].mxu1  ;;  %v2249_v49 = vpop.eup %2248  ;;  %2268 = vtanh.f32 %v1605_v55  ;;  %1756 = vmatprep.subr.bf16.mxu0 %v1721_v36 }
 0x247   : > { %v1609_v23 = vadd.f32 %v1608_v31, %v1335_v26  ;;  %v2251_v21 = vpop.eup %2250  ;;  %2270 = vtanh.f32 %v1494_v20  ;;  %1797 = vmatprep.subr.bf16.mxu1 %v1723_v57  ;;  %1757 = vmatpush1.bf16.msra.mxu0 %v1720_v14  ;;  %v1499_v50 = vpop.f32.mrb[16].mxu0 }
 0x248   : > { %v2253_v15 = vpop.eup %2252  ;;  %2272 = vtanh.f32 %v1607_v16  ;;  %1798 = vmatpush1.bf16.msra.mxu1 %v1722_v12  ;;  %v1345_v60 = vpop.permute.xlu0 %1344  ;;  %v1500_v47 = vadd.f32 %v1499_v50, %v1340_v52 }
 0x249   : > { %v2255_v51 = vpop.eup %2254  ;;  %2274 = vtanh.f32 %v1496_v43  ;;  %v1501_v18 = vpop.f32.mrb[17].mxu0 }
 0x24a   : > { %v2257_v19 = vpop.eup %2256  ;;  %2276 = vtanh.f32 %v1609_v23  ;;  %v1612_v38 = vpop.f32.mrb[16].mxu1  ;;  %v1502_v40 = vadd.f32 %v1501_v18, %v1340_v52  ;;  %v1724_v28 = vpack.c.bf16 %v2255_v51, %v2247_v48 }
 0x24b   : > { %v1503_v59 = vpop.f32.mrb[18].mxu0  ;;  %v2259_v24 = vpop.eup %2258  ;;  %2278 = vtanh.f32 %v1500_v47  ;;  %v1613_v30 = vadd.f32 %v1612_v38, %v1340_v52  ;;  %v1726_v29 = vpack.c.bf16 %v2257_v19, %v2251_v21 }
 0x24c   : > { %v1614_v33 = vpop.f32.mrb[17].mxu1  ;;  %v1504_v45 = vadd.f32 %v1503_v59, %v1345_v60  ;;  %v1505_v0 = vpop.f32.mrb[19].mxu0  ;;  %2280 = vtanh.f32 %v1502_v40  ;;  %v1725_v8 = vpack.c.bf16 %v2259_v24, %v2249_v49 }
 0x24d   : > { %v2261_v32 = vpop.eup %2260  ;;  %v1615_v1 = vadd.f32 %v1614_v33, %v1340_v52  ;;  %v1616_v7 = vpop.f32.mrb[18].mxu1  ;;  %2282 = vtanh.f32 %v1613_v30  ;;  %v1506_v22 = vadd.f32 %v1505_v0, %v1345_v60 }
 0x24e   : > { %v2263_v61 = vpop.eup %2262  ;;  %v1617_v17 = vadd.f32 %v1616_v7, %v1345_v60  ;;  %v1618_v44 = vpop.f32.mrb[19].mxu1  ;;  %v1727_v13 = vpack.c.bf16 %v2261_v32, %v2253_v15  ;;  %1758 = vmatprep.subr.bf16.mxu0 %v1725_v8 }
 0x24f   : > { %v2265_v35 = vpop.eup %2264  ;;  %2284 = vtanh.f32 %v1615_v1  ;;  %v1619_v54 = vadd.f32 %v1618_v44, %v1345_v60  ;;  %1759 = vmatpush1.bf16.msra.mxu0 %v1724_v28  ;;  %v1350_v58 = vpop.permute.xlu1 %1349 }
 0x250   : > { %v2267_v25 = vpop.eup %2266  ;;  %2286 = vtanh.f32 %v1504_v45  ;;  %1799 = vmatprep.subr.bf16.mxu1 %v1727_v13  ;;  %v1509_v39 = vpop.f32.mrb[20].mxu0 }
 0x251   : > { %v2269_v37 = vpop.eup %2268  ;;  %2288 = vtanh.f32 %v1617_v17  ;;  %1800 = vmatpush1.bf16.msra.mxu1 %v1726_v29  ;;  %v1355_v4 = vpop.permute.xlu0 %1354  ;;  %v1510_v3 = vadd.f32 %v1509_v39, %v1350_v58 }
 0x252   : > { %v2271_v34 = vpop.eup %2270  ;;  %2290 = vtanh.f32 %v1506_v22  ;;  %v1511_v42 = vpop.f32.mrb[21].mxu0 }
 0x253   : > { %v2273_v26 = vpop.eup %2272  ;;  %2292 = vtanh.f32 %v1619_v54  ;;  %v1622_v27 = vpop.f32.mrb[20].mxu1  ;;  %v1512_v53 = vadd.f32 %v1511_v42, %v1350_v58  ;;  %v1728_v62 = vpack.c.bf16 %v2271_v34, %v2263_v61 }
 0x254   : > { %v1513_v5 = vpop.f32.mrb[22].mxu0  ;;  %v2275_v6 = vpop.eup %2274  ;;  %2294 = vtanh.f32 %v1510_v3  ;;  %v1623_v2 = vadd.f32 %v1622_v27, %v1350_v58  ;;  %v1730_v63 = vpack.c.bf16 %v2273_v26, %v2267_v25 }
 0x255   : > { %v1624_v14 = vpop.f32.mrb[21].mxu1  ;;  %v1514_v10 = vadd.f32 %v1513_v5, %v1355_v4  ;;  %v1515_v46 = vpop.f32.mrb[23].mxu0  ;;  %2296 = vtanh.f32 %v1512_v53  ;;  %v1729_v11 = vpack.c.bf16 %v2275_v6, %v2265_v35 }
 0x256   : > { %v2277_v20 = vpop.eup %2276  ;;  %v1625_v9 = vadd.f32 %v1624_v14, %v1350_v58  ;;  %v1626_v12 = vpop.f32.mrb[22].mxu1  ;;  %2298 = vtanh.f32 %v1623_v2  ;;  %v1516_v36 = vadd.f32 %v1515_v46, %v1355_v4 }
 0x257   : > { %v2279_v55 = vpop.eup %2278  ;;  %v1627_v56 = vadd.f32 %v1626_v12, %v1355_v4  ;;  %v1628_v48 = vpop.f32.mrb[23].mxu1  ;;  %v1731_v16 = vpack.c.bf16 %v2277_v20, %v2269_v37  ;;  %1760 = vmatprep.subr.bf16.mxu0 %v1729_v11 }
 0x258   : > { %v2281_v43 = vpop.eup %2280  ;;  %2300 = vtanh.f32 %v1625_v9  ;;  %v1629_v31 = vadd.f32 %v1628_v48, %v1355_v4  ;;  %1761 = vmatpush1.bf16.msra.mxu0 %v1728_v62  ;;  %v1360_v23 = vpop.permute.xlu1 %1359 }
 0x259   : > { %v2283_v57 = vpop.eup %2282  ;;  %2302 = vtanh.f32 %v1514_v10  ;;  %1801 = vmatprep.subr.bf16.mxu1 %v1731_v16  ;;  %v1519_v21 = vpop.f32.mrb[24].mxu0 }
 0x25a   : > { %v2285_v49 = vpop.eup %2284  ;;  %2304 = vtanh.f32 %v1627_v56  ;;  %1802 = vmatpush1.bf16.msra.mxu1 %v1730_v63  ;;  %v1365_v52 = vpop.permute.xlu0 %1364  ;;  %v1520_v50 = vadd.f32 %v1519_v21, %v1360_v23 }
 0x25b   : > { %v2287_v15 = vpop.eup %2286  ;;  %2306 = vtanh.f32 %v1516_v36  ;;  %v1521_v51 = vpop.f32.mrb[25].mxu0 }
 0x25c   : > { %v2289_v60 = vpop.eup %2288  ;;  %2308 = vtanh.f32 %v1629_v31  ;;  %v1632_v47 = vpop.f32.mrb[24].mxu1  ;;  %v1522_v18 = vadd.f32 %v1521_v51, %v1360_v23  ;;  %v1732_v38 = vpack.c.bf16 %v2287_v15, %v2279_v55 }
 0x25d   : > { %v1523_v19 = vpop.f32.mrb[26].mxu0  ;;  %v2291_v40 = vpop.eup %2290  ;;  %2310 = vtanh.f32 %v1520_v50  ;;  %v1633_v59 = vadd.f32 %v1632_v47, %v1360_v23  ;;  %v1734_v33 = vpack.c.bf16 %v2289_v60, %v2283_v57 }
 0x25e   : > { %v1634_v28 = vpop.f32.mrb[25].mxu1  ;;  %v1524_v24 = vadd.f32 %v1523_v19, %v1365_v52  ;;  %v1525_v30 = vpop.f32.mrb[27].mxu0  ;;  %2312 = vtanh.f32 %v1522_v18  ;;  %v1733_v32 = vpack.c.bf16 %v2291_v40, %v2281_v43 }
 0x25f   : > { %v2293_v45 = vpop.eup %2292  ;;  %v1635_v0 = vadd.f32 %v1634_v28, %v1360_v23  ;;  %v1636_v29 = vpop.f32.mrb[26].mxu1  ;;  %2314 = vtanh.f32 %v1633_v59  ;;  %v1526_v8 = vadd.f32 %v1525_v30, %v1365_v52 }
 0x260   : > { %v2295_v1 = vpop.eup %2294  ;;  %v1637_v7 = vadd.f32 %v1636_v29, %v1365_v52  ;;  %v1638_v61 = vpop.f32.mrb[27].mxu1  ;;  %v1735_v17 = vpack.c.bf16 %v2293_v45, %v2285_v49  ;;  %1762 = vmatprep.subr.bf16.mxu0 %v1733_v32  ;;  %v1715_v45 = vld [vmem:[%s3244_s6] sm:$0x1] }
 0x261   : > { %v2297_v22 = vpop.eup %2296  ;;  %2316 = vtanh.f32 %v1635_v0  ;;  %v1639_v44 = vadd.f32 %v1638_v61, %v1365_v52  ;;  %1763 = vmatpush1.bf16.msra.mxu0 %v1732_v38  ;;  %v1370_v54 = vpop.permute.xlu1 %1369  ;;  %v2425_v0 = vmov 1983009808  }
 0x262   : > { %v2299_v13 = vpop.eup %2298  ;;  %2318 = vtanh.f32 %v1524_v24  ;;  %1803 = vmatprep.subr.bf16.mxu1 %v1735_v17  ;;  %v1529_v25 = vpop.f32.mrb[28].mxu0  ;;  %v1843_v29 = vunpack.c.l.s4 %v2425_v0 }
 0x263   : > { %v2301_v35 = vpop.eup %2300  ;;  %2320 = vtanh.f32 %v1637_v7  ;;  %1804 = vmatpush1.bf16.msra.mxu1 %v1734_v33  ;;  %v1375_v58 = vpop.permute.xlu0 %1374  ;;  %v1530_v39 = vadd.f32 %v1529_v25, %v1370_v54 }
 0x264   : > { %v2303_v37 = vpop.eup %2302  ;;  %2322 = vtanh.f32 %v1526_v8  ;;  %v1531_v34 = vpop.f32.mrb[29].mxu0  ;;  %v1844_v32 = vunpack.c.0.s8 %v1843_v29 }
 0x265   : > { %v2305_v4 = vpop.eup %2304  ;;  %2324 = vtanh.f32 %v1639_v44  ;;  %v1642_v3 = vpop.f32.mrb[28].mxu1  ;;  %v1532_v42 = vadd.f32 %v1531_v34, %v1370_v54  ;;  %v1736_v27 = vpack.c.bf16 %v2303_v37, %v2295_v1 }
 0x266   : > { %v1533_v26 = vpop.f32.mrb[30].mxu0  ;;  %v2307_v53 = vpop.eup %2306  ;;  %2326 = vtanh.f32 %v1530_v39  ;;  %v1643_v5 = vadd.f32 %v1642_v3, %v1370_v54  ;;  %v1738_v14 = vpack.c.bf16 %v2305_v4, %v2299_v13  ;;  %v1847_v13 = vsub.s32 %v1844_v32, %v2679_v41 }
 0x267   : > { %v1644_v62 = vpop.f32.mrb[29].mxu1  ;;  %v1534_v6 = vadd.f32 %v1533_v26, %v1375_v58  ;;  %v1535_v2 = vpop.f32.mrb[31].mxu0  ;;  %2328 = vtanh.f32 %v1532_v42  ;;  %v1737_v20 = vpack.c.bf16 %v2307_v53, %v2297_v22 }
 0x268   : > { %v2309_v10 = vpop.eup %2308  ;;  %v1645_v46 = vadd.f32 %v1644_v62, %v1370_v54  ;;  %v1646_v63 = vpop.f32.mrb[30].mxu1  ;;  %2330 = vtanh.f32 %v1643_v5  ;;  %v1536_v11 = vadd.f32 %v1535_v2, %v1375_v58 }
 0x269   : > { %v2311_v9 = vpop.eup %2310  ;;  %v1647_v12 = vadd.f32 %v1646_v63, %v1375_v58  ;;  %v1648_v55 = vpop.f32.mrb[31].mxu1  ;;  %v1739_v56 = vpack.c.bf16 %v2309_v10, %v2301_v35  ;;  %1764 = vmatprep.subr.bf16.mxu0 %v1737_v20 }
 0x26a   : > { %v2313_v36 = vpop.eup %2312  ;;  %2332 = vtanh.f32 %v1645_v46  ;;  %v1649_v48 = vadd.f32 %v1648_v55, %v1375_v58  ;;  %1765 = vmatpush1.bf16.msra.mxu0 %v1736_v27  ;;  %v1752_v1 = vpop.permute.xlu1 %1751 }
 0x26b   : > { %v2315_v16 = vpop.eup %2314  ;;  %2334 = vtanh.f32 %v1534_v6  ;;  %1805 = vmatprep.subr.bf16.mxu1 %v1739_v56 }
 0x26c   : > { %v2317_v43 = vpop.eup %2316  ;;  %2336 = vtanh.f32 %v1647_v12  ;;  %1806 = vmatpush1.bf16.msra.mxu1 %v1738_v14 }
 0x26d   : > { %v2319_v31 = vpop.eup %2318  ;;  %2338 = vtanh.f32 %v1536_v11 }
 0x26e   : > { %v2321_v57 = vpop.eup %2320  ;;  %2340 = vtanh.f32 %v1649_v48  ;;  %v1740_v49 = vpack.c.bf16 %v2319_v31, %v2311_v9 }
 0x26f   : > { %v2323_v23 = vpop.eup %2322  ;;  %v1742_v21 = vpack.c.bf16 %v2321_v57, %v2315_v16 }
 0x270   : > { %v2325_v15 = vpop.eup %2324  ;;  %v1741_v52 = vpack.c.bf16 %v2323_v23, %v2313_v36 }
 0x271   : > { %v2327_v50 = vpop.eup %2326  ;;  %v1743_v51 = vpack.c.bf16 %v2325_v15, %v2317_v43 }
 0x272   : > { %v2329_v60 = vpop.eup %2328  ;;  %1766 = vmatprep.subr.bf16.mxu0 %v1741_v52 }
 0x273   : > { %v2331_v47 = vpop.eup %2330  ;;  %1807 = vmatprep.subr.bf16.mxu1 %v1743_v51  ;;  %1767 = vmatpush1.bf16.msra.mxu0 %v1740_v49 }
 0x274   : > { %v2333_v18 = vpop.eup %2332  ;;  %1808 = vmatpush1.bf16.msra.mxu1 %v1742_v21 }
 0x275   : > { %v2335_v19 = vpop.eup %2334 }
 0x276   : > { %v2337_v38 = vpop.eup %2336  ;;  %v1744_v40 = vpack.c.bf16 %v2335_v19, %v2327_v50 }
 0x277   : > { %v2339_v59 = vpop.eup %2338  ;;  %v1746_v28 = vpack.c.bf16 %v2337_v38, %v2331_v47 }
 0x278   : > { %v2341_v24 = vpop.eup %2340  ;;  %v1745_v30 = vpack.c.bf16 %v2339_v59, %v2329_v60 }
 0x279   : > { %v1747_v33 = vpack.c.bf16 %v2341_v24, %v2333_v18 }
 0x27a   : > { %1768 = vmatprep.subr.bf16.mxu0 %v1745_v30 }
 0x27b   : > { %1809 = vmatprep.subr.bf16.mxu1 %v1747_v33  ;;  %1769 = vmatpush1.bf16.msra.mxu0 %v1744_v40 }
 0x27c   : > { %1810 = vmatpush1.bf16.msra.mxu1 %v1746_v28 }
 0x27e   : > { %1787 = vmatmul.mubr.bf16.vlgmr.msra.gmra.mrb[32].mxu0 %v1715_v45 }
 0x27f   : > { %1828 = vmatmul.mubr.bf16.vlgmr.msra.gmra.mrb[32].mxu1 %v1715_v45 }
 0x351   : > { %v1788_v7 = vpop.f32.mrb[32].mxu0 }
 0x352   : > { %v1789_v8 = vadd.f32 %v1788_v7, %v1752_v1  ;;  %v1829_v61 = vpop.f32.mrb[32].mxu1  ;;  %v1790_v17 = vpop.f32.mrb[33].mxu0 }
 0x353   : > { %v1830_v22 = vadd.f32 %v1829_v61, %v1752_v1  ;;  %v1791_v44 = vadd.f32 %v1790_v17, %v1752_v1  ;;  %v1831_v35 = vpop.f32.mrb[33].mxu1  ;;  %v1792_v54 = vpop.f32.mrb[34].mxu0 }
 0x354   : > { %v1832_v25 = vadd.f32 %v1831_v35, %v1752_v1  ;;  %v1833_v37 = vpop.f32.mrb[34].mxu1  ;;  %v1793_v58 = vpop.f32.mrb[35].mxu0 }
 0x355   : > { %v1840_v39 = vcombine.low %v1789_v8, %v1791_v44  ;;  %v1834_v34 = vpop.f32.mrb[35].mxu1 }
 0x356   : > { %v1841_v4 = vcombine.low %v1830_v22, %v1832_v25 }
 0x357   : > { %v1848_v3 = vrot.slane %v1840_v39, %v1847_v13 }
 0x358   : > { %v1855_v42 = vrot.slane %v1841_v4, %v1847_v13 }
 0x35a   : > { %v1856_v26 = vcombine.low %v1848_v3, %v1855_v42 }
 0x35c   : > { %1858 = vst [vmem:[%s347_s11] sm:$0xff] %v1856_v26 }
 0x35d   : > { %2355 = shalt.err (!%p2352_p5)
}
 0x35e   : > { %s2356_s24 = scalar_lea.hbm %s3191_s19, 128  ;;  %s2360_s11 = scalar_lea.hbm %s3246_s8, 256 }
 0x35f   : > { %p2357_p6 = scmp.ne.s32.totalorder %s3191_s19, %s2356_s24  ;;  %p2361_p10 = scmp.lt.u32.totalorder %s3191_s19, %s3246_s8 }
 0x360   : > { %p2362_p11 = scmp.lt.u32.totalorder %s2360_s11, %s2356_s24  ;;  %p2364_p13 = scmp.lt.u32.totalorder %s2356_s24, %s3191_s19 }
 0x361   : > { %p2358_p7 = pnand %p2357_p6, %p2512_p4 }
 0x362   : > { %p2363_p12 = por %p2362_p11, %p2361_p10 }
 0x363   : > { %p2359_p9 = pneg %p2358_p7 }
 0x364   : > { %p2365_p0 = por %p2364_p13, %p2363_p12 }
 0x366   : > { %p2366_p1 = pnand %p2365_p0, %p2359_p9 }
 0x368   : > { %2369 = shalt.err (!%p2366_p1)
}
 0x369   : > { %1991 = dma.vmem_to_hbm [thread:$0]  (%p2512_p4), %s3193_s12, 128, %s3191_s19, %s1860_s20  }
 0x36a PF: > { %p1997_p2 = scmp.ge.s32.totalorder %s2420_s10, 2  ;;  %s1888_s21 = sand.u32 1, %s2400_s27  }
 0x36b   : > { %s1889_s30 = scalar_lea.sflag [#allocation3], %s1888_s21 }
 0x36c   : > { %p1994_p3 = pnand %p1997_p2, %p2519_p8 }
 0x36e   : > { %2395 = dma.done.wait (!%p1994_p3), %s1889_s30, 128  }
 0x36f   : > { %2397 = vsyncadd (!%p1994_p3), %s1889_s30, 4294967168  ;;  %s21_s10 = sadd.s32 1, %s2420_s10   ;;  %s3249_s27 = smov %s2404_s28 }
 0x370   : > { %p18_p5 = scmp.ge.s32.totalorder %s21_s10, 4   ;;  %s3250_s28 = smov %s2408_s29 }
 0x371   : > { %s3251_s29 = smov %s2525_s18  ;;  %s3252_s30 = smov %s2416_s9 }
 0x372   : > { %s3253_s9 = smov %s3255_s13  ;;  %20 = sbr.rel (!%p18_p5) target bundleno = 4 (0x4), region = 90 }
 0x379   :  { %1894 = vsyncpa [#allocation3], 1 }
 0x37a   :  { %1896 = vsyncpa [#allocation3 + $0x1], 1 }

</bundles_post_ra>
